<compile_context>
chip_gen: v7x
topology: tpu7x:2x2x1
jax: 0.10.0
libtpu: 0.0.40
codegen_flags: <defaults>
</compile_context>

<pallas_src>
import jax
import jax.numpy as jnp
from jax.experimental import pallas as pl
from jax.experimental.pallas import tpu as pltpu

HIDDEN = 128
_TILE_GRAIN = 256  # bf16 sublane packing (16) * MXU-friendly M, and >= (8,128) sublane rule


def _round_up(x: int, m: int) -> int:
    return ((x + m - 1) // m) * m


def _choose_tile(batch: int, block_b: int) -> int:
    """Batch tile: multiple of 256, capped at block_b, >= 2 grid steps when possible."""
    block_b = _round_up(block_b, _TILE_GRAIN)
    target = _round_up(batch, _TILE_GRAIN)
    if target >= 2 * _TILE_GRAIN:
        # Prefer at least two tiles so the "parallel" axis can use both TCs on v7x.
        target = _round_up((target + 1) // 2, _TILE_GRAIN)
    return max(_TILE_GRAIN, min(block_b, target))


def _critic_kernel(s_ref, a_ref, w1s_ref, w1a_ref, b1_ref, w2_ref, b2_ref,
                   w3_ref, b3_ref, out_ref):
    # Layer 1: relu([state, action] @ W1 + b1) as two K-split MXU matmuls
    # (replaces a wrapper-side concat that would round-trip HBM).
    s_bf = s_ref[...].astype(jnp.bfloat16)
    a_bf = a_ref[...].astype(jnp.bfloat16)
    h1 = jnp.dot(s_bf, w1s_ref[...], preferred_element_type=jnp.float32)
    h1 = h1 + jnp.dot(a_bf, w1a_ref[...], preferred_element_type=jnp.float32)
    h1 = jnp.maximum(h1 + b1_ref[...], 0.0)                       # f32 (TM, 128)

    # Layer 2: relu(h1 @ W2 + b2).
    h2 = jnp.dot(h1.astype(w2_ref.dtype), w2_ref[...],
                 preferred_element_type=jnp.float32)
    h2 = jnp.maximum(h2 + b2_ref[...], 0.0)                       # f32 (TM, 128)

    # Value head (out_features = 1): VPU multiply + lane reduction, then stored
    # lane-dense as a (1, TM) row (unmasked vst) instead of a (TM, 1) column.
    v = jnp.sum(h2 * w3_ref[...], axis=-1)                        # (TM,)
    out_ref[...] = (v + b3_ref[0]).reshape(1, -1)


def critic_forward(state, action, params, *, block_b: int = 8192):
    """Pallas-backed Critic forward. state: (B, Ds), action: (B, Da) -> (B, 1)."""
    w1, b1, w2, b2, w3_row, b3 = params
    B, Ds = state.shape
    Da = action.shape[1]
    Din = Ds + Da
    assert w1.shape[0] == Din and w1.shape[1] == HIDDEN

    tm = _choose_tile(B, block_b)
    Bp = _round_up(B, tm)
    num_tiles = Bp // tm

    s = state.astype(jnp.float32)
    a = action.astype(jnp.float32)
    if Bp != B:
        s = jnp.pad(s, ((0, Bp - B), (0, 0)))
        a = jnp.pad(a, ((0, Bp - B), (0, 0)))

    # Resident weights: bf16 for the MXU; biases / head row in f32; b3 scalar in SMEM.
    w1s_bf = w1[:Ds].astype(jnp.bfloat16)                 # (Ds, 128)
    w1a_bf = w1[Ds:].astype(jnp.bfloat16)                 # (Da, 128)
    w2_bf = w2.astype(jnp.bfloat16)                       # (128, 128)
    b1_f = b1.reshape(1, HIDDEN).astype(jnp.float32)
    b2_f = b2.reshape(1, HIDDEN).astype(jnp.float32)
    w3_f = w3_row.reshape(1, HIDDEN).astype(jnp.float32)
    b3_f = b3.reshape(1).astype(jnp.float32)

    flops = 2 * Bp * (Din * HIDDEN + HIDDEN * HIDDEN + HIDDEN)
    bytes_accessed = (Bp * Din * 4 + Bp * 4
                      + Din * HIDDEN * 2 + HIDDEN * HIDDEN * 2
                      + 3 * HIDDEN * 4 + 4)

    out = pl.pallas_call(
        _critic_kernel,
        out_shape=jax.ShapeDtypeStruct((1, Bp), jnp.float32),
        grid=(num_tiles,),
        in_specs=[
            pl.BlockSpec((tm, Ds), lambda i: (i, 0)),            # state tile (streamed)
            pl.BlockSpec((tm, Da), lambda i: (i, 0)),            # action tile (streamed)
            pl.BlockSpec((Ds, HIDDEN), lambda i: (0, 0)),        # W1[:Ds]   (resident)
            pl.BlockSpec((Da, HIDDEN), lambda i: (0, 0)),        # W1[Ds:]   (resident)
            pl.BlockSpec((1, HIDDEN), lambda i: (0, 0)),         # b1
            pl.BlockSpec((HIDDEN, HIDDEN), lambda i: (0, 0)),    # W2        (resident)
            pl.BlockSpec((1, HIDDEN), lambda i: (0, 0)),         # b2
            pl.BlockSpec((1, HIDDEN), lambda i: (0, 0)),         # w3 row
            pl.BlockSpec(memory_space=pltpu.MemorySpace.SMEM),   # b3 scalar
        ],
        out_specs=pl.BlockSpec((1, tm), lambda i: (0, i)),       # lane-dense output row
        compiler_params=pltpu.CompilerParams(
            dimension_semantics=("parallel",),
            vmem_limit_bytes=32 * 1024 * 1024),
        cost_estimate=pl.CostEstimate(
            flops=flops, transcendentals=0, bytes_accessed=bytes_accessed),
    )(s, a, w1s_bf, w1a_bf, b1_f, w2_bf, b2_f, w3_f, b3_f)

    return out.reshape(Bp, 1)[:B]


def init_critic_params(key, state_dim, action_dim):
    """Init mirroring nn.Linear default U(-1/sqrt(fan_in), +1/sqrt(fan_in)).

    Weights stored as (in_features, out_features) so y = x @ W + b.
    The output layer's weight is stored as a (1, 128) row; its bias as a (1,) scalar.
    """
    in_dim = state_dim + action_dim
    ks = jax.random.split(key, 6)

    def lin(kw, kb, fan_in, fan_out):
        bound = 1.0 / jnp.sqrt(jnp.float32(fan_in))
        w = jax.random.uniform(kw, (fan_in, fan_out), jnp.float32, -bound, bound)
        b = jax.random.uniform(kb, (1, fan_out), jnp.float32, -bound, bound)
        return w, b

    w1, b1 = lin(ks[0], ks[1], in_dim, HIDDEN)
    w2, b2 = lin(ks[2], ks[3], HIDDEN, HIDDEN)
    w3, b3 = lin(ks[4], ks[5], HIDDEN, 1)
    w3_row = w3.T             # (1, 128)
    b3 = b3.reshape(1)        # (1,)
    return (w1, b1, w2, b2, w3_row, b3)


def critic_reference(state, action, params):
    """Pure-JAX f32 reference matching the PyTorch module."""
    w1, b1, w2, b2, w3_row, b3 = params
    x = jnp.concatenate([state, action], axis=-1)
    h1 = jax.nn.relu(x @ w1 + b1)
    h2 = jax.nn.relu(h1 @ w2 + b2)
    return h2 @ w3_row.T + b3


if __name__ == "__main__":
    B, STATE_DIM, ACTION_DIM = 4, 24, 8

    key = jax.random.PRNGKey(0)
    k_params, k_state, k_action = jax.random.split(key, 3)

    params = init_critic_params(k_params, STATE_DIM, ACTION_DIM)
    state = jax.random.normal(k_state, (B, STATE_DIM), jnp.float32)
    action = jax.random.normal(k_action, (B, ACTION_DIM), jnp.float32)

    value = jax.block_until_ready(critic_forward(state, action, params))
    ref = critic_reference(state, action, params)
    assert value.shape == (B, 1)
    # bf16 MXU inputs (f32 accumulation) -> loose tolerance vs. the f32 reference.
    assert jnp.allclose(value, ref, atol=5e-2, rtol=5e-2), (value, ref)

    # Multi-tile path: exercises grid > 1, batch padding, and lane-dense output blocks.
    B2 = 600
    k_s2, k_a2 = jax.random.split(jax.random.PRNGKey(1))
    state2 = jax.random.normal(k_s2, (B2, STATE_DIM), jnp.float32)
    action2 = jax.random.normal(k_a2, (B2, ACTION_DIM), jnp.float32)
    value2 = jax.block_until_ready(
        critic_forward(state2, action2, params, block_b=512))
    ref2 = critic_reference(state2, action2, params)
    assert value2.shape == (B2, 1)
    assert jnp.allclose(value2, ref2, atol=5e-2, rtol=5e-2)

    print("KERNEL_OK")
</pallas_src>

<mosaic_0001>
module attributes {stable_mosaic.version = 11 : i64} {
  func.func @_critic_kernel(%arg0: i32, %arg1: memref<256x24xf32, #tpu.memory_space<vmem>>, %arg2: memref<256x8xf32, #tpu.memory_space<vmem>>, %arg3: memref<24x128xbf16, #tpu.memory_space<vmem>>, %arg4: memref<8x128xbf16, #tpu.memory_space<vmem>>, %arg5: memref<1x128xf32, #tpu.memory_space<vmem>>, %arg6: memref<128x128xbf16, #tpu.memory_space<vmem>>, %arg7: memref<1x128xf32, #tpu.memory_space<vmem>>, %arg8: memref<1x128xf32, #tpu.memory_space<vmem>>, %arg9: memref<1xf32, #tpu.memory_space<smem>>, %arg10: memref<1x256xf32, #tpu.memory_space<vmem>>) attributes {dimension_semantics = [#tpu.dimension_semantics<parallel>], iteration_bounds = array<i64: 1>, scalar_prefetch = 0 : i64, scratch_operands = 0 : i64, tpu.core_type = #tpu.core_type<tc>, window_params = [{transform_indices = @transform_0, window_bounds = array<i64: 256, 24>}, {transform_indices = @transform_1, window_bounds = array<i64: 256, 8>}, {pipeline_mode = #tpu.pipeline_mode<synchronous>, transform_indices = @transform_2, window_bounds = array<i64: 24, 128>}, {pipeline_mode = #tpu.pipeline_mode<synchronous>, transform_indices = @transform_3, window_bounds = array<i64: 8, 128>}, {pipeline_mode = #tpu.pipeline_mode<synchronous>, transform_indices = @transform_4, window_bounds = array<i64: 1, 128>}, {pipeline_mode = #tpu.pipeline_mode<synchronous>, transform_indices = @transform_5, window_bounds = array<i64: 128, 128>}, {pipeline_mode = #tpu.pipeline_mode<synchronous>, transform_indices = @transform_6, window_bounds = array<i64: 1, 128>}, {pipeline_mode = #tpu.pipeline_mode<synchronous>, transform_indices = @transform_7, window_bounds = array<i64: 1, 128>}, {transform_indices = @transform_8, window_bounds = array<i64: 1>}, {transform_indices = @transform_9, window_bounds = array<i64: 1, 256>}]} {
    %c0 = arith.constant 0 : index
    %c0_0 = arith.constant 0 : index
    %0 = vector.load %arg1[%c0, %c0_0] : memref<256x24xf32, #tpu.memory_space<vmem>>, vector<256x24xf32>
    %1 = arith.truncf %0 : vector<256x24xf32> to vector<256x24xbf16>
    %c0_1 = arith.constant 0 : index
    %c0_2 = arith.constant 0 : index
    %2 = vector.load %arg2[%c0_1, %c0_2] : memref<256x8xf32, #tpu.memory_space<vmem>>, vector<256x8xf32>
    %3 = arith.truncf %2 : vector<256x8xf32> to vector<256x8xbf16>
    %c0_3 = arith.constant 0 : index
    %c0_4 = arith.constant 0 : index
    %4 = vector.load %arg3[%c0_3, %c0_4] : memref<24x128xbf16, #tpu.memory_space<vmem>>, vector<24x128xbf16>
    %cst = arith.constant dense<0.000000e+00> : vector<256x128xf32>
    %5 = tpu.matmul %1, %4, %cst {dimension_numbers = #tpu.dot_dimension_numbers<[1], [0], [0], [1], [0, 0, 1, 1], [], []>} : vector<256x24xbf16>, vector<24x128xbf16>, vector<256x128xf32> -> vector<256x128xf32>
    %c0_5 = arith.constant 0 : index
    %c0_6 = arith.constant 0 : index
    %6 = vector.load %arg4[%c0_5, %c0_6] : memref<8x128xbf16, #tpu.memory_space<vmem>>, vector<8x128xbf16>
    %cst_7 = arith.constant dense<0.000000e+00> : vector<256x128xf32>
    %7 = tpu.matmul %3, %6, %cst_7 {dimension_numbers = #tpu.dot_dimension_numbers<[1], [0], [0], [1], [0, 0, 1, 1], [], []>} : vector<256x8xbf16>, vector<8x128xbf16>, vector<256x128xf32> -> vector<256x128xf32>
    %8 = arith.addf %5, %7 : vector<256x128xf32>
    %c0_8 = arith.constant 0 : index
    %c0_9 = arith.constant 0 : index
    %9 = vector.load %arg5[%c0_8, %c0_9] : memref<1x128xf32, #tpu.memory_space<vmem>>, vector<1x128xf32>
    %10 = vector.broadcast %9 : vector<1x128xf32> to vector<256x128xf32>
    %11 = arith.addf %8, %10 : vector<256x128xf32>
    %cst_10 = arith.constant 0.000000e+00 : f32
    %12 = vector.broadcast %cst_10 : f32 to vector<256x128xf32>
    %13 = arith.maximumf %11, %12 : vector<256x128xf32>
    %14 = arith.truncf %13 : vector<256x128xf32> to vector<256x128xbf16>
    %c0_11 = arith.constant 0 : index
    %c0_12 = arith.constant 0 : index
    %15 = vector.load %arg6[%c0_11, %c0_12] : memref<128x128xbf16, #tpu.memory_space<vmem>>, vector<128x128xbf16>
    %cst_13 = arith.constant dense<0.000000e+00> : vector<256x128xf32>
    %16 = tpu.matmul %14, %15, %cst_13 {dimension_numbers = #tpu.dot_dimension_numbers<[1], [0], [0], [1], [0, 0, 1, 1], [], []>} : vector<256x128xbf16>, vector<128x128xbf16>, vector<256x128xf32> -> vector<256x128xf32>
    %c0_14 = arith.constant 0 : index
    %c0_15 = arith.constant 0 : index
    %17 = vector.load %arg7[%c0_14, %c0_15] : memref<1x128xf32, #tpu.memory_space<vmem>>, vector<1x128xf32>
    %18 = vector.broadcast %17 : vector<1x128xf32> to vector<256x128xf32>
    %19 = arith.addf %16, %18 : vector<256x128xf32>
    %cst_16 = arith.constant 0.000000e+00 : f32
    %20 = vector.broadcast %cst_16 : f32 to vector<256x128xf32>
    %21 = arith.maximumf %19, %20 : vector<256x128xf32>
    %c0_17 = arith.constant 0 : index
    %c0_18 = arith.constant 0 : index
    %22 = vector.load %arg8[%c0_17, %c0_18] : memref<1x128xf32, #tpu.memory_space<vmem>>, vector<1x128xf32>
    %23 = vector.broadcast %22 : vector<1x128xf32> to vector<256x128xf32>
    %24 = arith.mulf %21, %23 : vector<256x128xf32>
    %cst_19 = arith.constant dense<0.000000e+00> : vector<256xf32>
    %25 = vector.multi_reduction <add>, %24, %cst_19 [1] : vector<256x128xf32> to vector<256xf32>
    %c0_20 = arith.constant 0 : index
    %26 = memref.load %arg9[%c0_20] : memref<1xf32, #tpu.memory_space<smem>>
    %27 = vector.broadcast %26 : f32 to vector<256xf32>
    %28 = arith.addf %25, %27 : vector<256xf32>
    %29 = vector.shape_cast %28 : vector<256xf32> to vector<1x256xf32>
    %c0_21 = arith.constant 0 : index
    %c0_22 = arith.constant 0 : index
    %30 = vector.load %arg10[%c0_21, %c0_22] : memref<1x256xf32, #tpu.memory_space<vmem>>, vector<1x256xf32>
    tpu.vector_store %arg10[%c0_21, %c0_22], %29 {strides = array<i32>} : memref<1x256xf32, #tpu.memory_space<vmem>>, vector<1x256xf32>,
    return
  }
  func.func @transform_0(%arg0: i32) -> (i32, i32) {
    %c0_i32 = arith.constant 0 : i32
    %c0_i32_0 = arith.constant 0 : i32
    return %arg0, %c0_i32 : i32, i32
  }
  func.func @transform_1(%arg0: i32) -> (i32, i32) {
    %c0_i32 = arith.constant 0 : i32
    %c0_i32_0 = arith.constant 0 : i32
    return %arg0, %c0_i32 : i32, i32
  }
  func.func @transform_2(%arg0: i32) -> (i32, i32) {
    %c0_i32 = arith.constant 0 : i32
    %c0_i32_0 = arith.constant 0 : i32
    %c0_i32_1 = arith.constant 0 : i32
    return %c0_i32, %c0_i32_0 : i32, i32
  }
  func.func @transform_3(%arg0: i32) -> (i32, i32) {
    %c0_i32 = arith.constant 0 : i32
    %c0_i32_0 = arith.constant 0 : i32
    %c0_i32_1 = arith.constant 0 : i32
    return %c0_i32, %c0_i32_0 : i32, i32
  }
  func.func @transform_4(%arg0: i32) -> (i32, i32) {
    %c0_i32 = arith.constant 0 : i32
    %c0_i32_0 = arith.constant 0 : i32
    %c0_i32_1 = arith.constant 0 : i32
    return %c0_i32, %c0_i32_0 : i32, i32
  }
  func.func @transform_5(%arg0: i32) -> (i32, i32) {
    %c0_i32 = arith.constant 0 : i32
    %c0_i32_0 = arith.constant 0 : i32
    %c0_i32_1 = arith.constant 0 : i32
    return %c0_i32, %c0_i32_0 : i32, i32
  }
  func.func @transform_6(%arg0: i32) -> (i32, i32) {
    %c0_i32 = arith.constant 0 : i32
    %c0_i32_0 = arith.constant 0 : i32
    %c0_i32_1 = arith.constant 0 : i32
    return %c0_i32, %c0_i32_0 : i32, i32
  }
  func.func @transform_7(%arg0: i32) -> (i32, i32) {
    %c0_i32 = arith.constant 0 : i32
    %c0_i32_0 = arith.constant 0 : i32
    %c0_i32_1 = arith.constant 0 : i32
    return %c0_i32, %c0_i32_0 : i32, i32
  }
  func.func @transform_8(%arg0: i32) -> i32 {
    %c0_i32 = arith.constant 0 : i32
    %c0_i32_0 = arith.constant 0 : i32
    return %c0_i32 : i32
  }
  func.func @transform_9(%arg0: i32) -> (i32, i32) {
    %c0_i32 = arith.constant 0 : i32
    %c0_i32_0 = arith.constant 0 : i32
    return %c0_i32, %arg0 : i32, i32
  }
}

</mosaic_0001>

<bundles_post_ra>
// kernel: tpu_custom_call.1
= control target key start
LH: loop header
LB: loop body
LE: loop exit
PB: predicated region body
PF: predicated region fallthrough
CT: control target
= control target key end

     0   :  { %vm184_vm0 = vcmask 1043456   ;;  %vm135_vm1 = vcmask 64512   ;;  %vm358_vm2 = vcmask 195584   ;;  %s5699_s0 = inlined_call_operand.vmem [shape: f32[256,24], index: 0, kind: input, shape index: {}]   ;;  %s5700_s1 = inlined_call_operand.vmem [shape: f32[256,8], index: 1, kind: input, shape index: {}]   ;;  %s5701_s2 = inlined_call_operand.vmem [shape: bf16[24,128], index: 2, kind: input, shape index: {}]   ;;  %s5702_s3 = inlined_call_operand.vmem [shape: bf16[8,128], index: 3, kind: input, shape index: {}]   ;;  %s5703_s4 = inlined_call_operand.vmem [shape: f32[1,128], index: 4, kind: input, shape index: {}]   ;;  %s5704_s5 = inlined_call_operand.vmem [shape: bf16[128,128], index: 5, kind: input, shape index: {}]   ;;  %s5705_s6 = inlined_call_operand.vmem [shape: f32[1,128], index: 6, kind: input, shape index: {}]   ;;  %s5706_s7 = inlined_call_operand.vmem [shape: f32[1,128], index: 7, kind: input, shape index: {}]   ;;  %s5707_s8 = inlined_call_operand.<no memory space> [shape: f32[1], index: 8, kind: input, shape index: {}]   ;;  %s5708_s9 = inlined_call_operand.hbm [shape: f32[1,256], index: 9, kind: output, shape index: {}]  }
   0x1   :  { %v134_v0 = vld [vmem:[%s5702_s3] sm:$0xf]  ;;  %v84_v2 = vld [vmem:[%s5700_s1 + $0x8] sm:$0xff]  ;;  %v85_v5 = vld [vmem:[%s5700_s1 + $0x10] sm:$0xff] }
   0x2   :  { %v83_v1 = vld [vmem:[%s5700_s1] sm:$0xff]  ;;  %4260 = vmatprep.subr.msk.bf16.mxu0 %vm184_vm0, %v134_v0  ;;  %v186_v3 = vsel %vm184_vm0, %v134_v0, 0  ;;  %v86_v6 = vld [vmem:[%s5700_s1 + $0x18] sm:$0xff]  ;;  %4261 = vmatprep.subr.msk.bf16.mxu1 %vm184_vm0, %v134_v0  ;;  %v88_v10 = vld [vmem:[%s5700_s1 + $0x28] sm:$0xff] }
   0x3   :  { %v115_v4 = vpack.c.bf16 %v84_v2, %v83_v1  ;;  %4109 = vmatpush3.bf16.msra.mxu0 %v186_v3  ;;  %v116_v7 = vpack.c.bf16 %v86_v6, %v85_v5  ;;  %v4268_v8 = vld [vmem:[%s5701_s2] sm:$0xff]   ;;  %4227 = vmatpush3.bf16.msra.mxu1 %v186_v3  ;;  %v4269_v12 = vld [vmem:[%s5701_s2 + $0x8] ss:$0 sps:$4 sm:$0xff]   ;;  %v89_v13 = vld [vmem:[%s5700_s1 + $0x30] sm:$0xff] }
   0x4   :  { %v87_v9 = vld [vmem:[%s5700_s1 + $0x20] sm:$0xff]  ;;  %4142 = vmatprep.subr.bf16.mxu0 %v4268_v8  ;;  %v90_v14 = vld [vmem:[%s5700_s1 + $0x38] sm:$0xff]  ;;  %v92_v16 = vld [vmem:[%s5700_s1 + $0x48] sm:$0xff]  ;;  %v408_v17 = vsel %vm184_vm0, %v4269_v12, 0 }
   0x5   :  { %4110 = vmatprep.mubr.msk.bf16.mxu0 %vm135_vm1, %v115_v4  ;;  %v117_v11 = vpack.c.bf16 %v88_v10, %v87_v9  ;;  %v91_v15 = vld [vmem:[%s5700_s1 + $0x40] sm:$0xff]  ;;  %v118_v18 = vpack.c.bf16 %v90_v14, %v89_v13  ;;  %v100_v21 = vld [vmem:[%s5700_s1 + $0x88] sm:$0xff]  ;;  %v101_v22 = vld [vmem:[%s5700_s1 + $0x90] sm:$0xff] }
   0x6   :  { %4111 = vmatmul.mubr.msk.bf16.vlgmr.msra.gmra.mrb[0].mxu0 %vm135_vm1, %v116_v7  ;;  %v119_v19 = vpack.c.bf16 %v92_v16, %v91_v15  ;;  %v99_v20 = vld [vmem:[%s5700_s1 + $0x80] sm:$0xff]  ;;  %v102_v23 = vld [vmem:[%s5700_s1 + $0x98] sm:$0xff]  ;;  %v93_v24 = vld [vmem:[%s5700_s1 + $0x50] sm:$0xff] }
   0x7   :  { %4143 = vmatpush3.bf16.msra.mxu0 %v4268_v8  ;;  %4114 = vmatprep.mubr.msk.bf16.mxu0 %vm135_vm1, %v117_v11  ;;  %v94_v25 = vld [vmem:[%s5700_s1 + $0x58] sm:$0xff]  ;;  %v95_v26 = vld [vmem:[%s5700_s1 + $0x60] sm:$0xff]  ;;  %v123_v27 = vpack.c.bf16 %v100_v21, %v99_v20  ;;  %v124_v28 = vpack.c.bf16 %v102_v23, %v101_v22  ;;  %v96_v29 = vld [vmem:[%s5700_s1 + $0x68] sm:$0xff] }
   0x8   :  { %4262 = vmatprep.subr.msk.bf16.mxu0 %vm184_vm0, %v4269_v12  ;;  %v103_v30 = vld [vmem:[%s5700_s1 + $0xa0] sm:$0xff]  ;;  %v104_v31 = vld [vmem:[%s5700_s1 + $0xa8] sm:$0xff]  ;;  %v120_v33 = vpack.c.bf16 %v94_v25, %v93_v24  ;;  %v121_v34 = vpack.c.bf16 %v96_v29, %v95_v26  ;;  %v105_v35 = vld [vmem:[%s5700_s1 + $0xb0] sm:$0xff] }
   0x9   :  { %4126 = vmatprep.mubr.msk.bf16.mxu1 %vm135_vm1, %v123_v27  ;;  %v125_v32 = vpack.c.bf16 %v104_v31, %v103_v30  ;;  %v106_v36 = vld [vmem:[%s5700_s1 + $0xb8] sm:$0xff]  ;;  %v107_v37 = vld [vmem:[%s5700_s1 + $0xc0] sm:$0xff]  ;;  %v108_v38 = vld [vmem:[%s5700_s1 + $0xc8] sm:$0xff] }
   0xa   :  { %4127 = vmatmul.mubr.msk.bf16.vlgmr.msra.gmra.mrb[0].mxu1 %vm135_vm1, %v124_v28  ;;  %v126_v39 = vpack.c.bf16 %v106_v36, %v105_v35  ;;  %v97_v40 = vld [vmem:[%s5700_s1 + $0x70] sm:$0xff]  ;;  %v98_v41 = vld [vmem:[%s5700_s1 + $0x78] sm:$0xff]  ;;  %v35_v42 = vld [vmem:[%s5699_s0] sm:$0xff]  ;;  %v127_v43 = vpack.c.bf16 %v108_v38, %v107_v37 }
   0xb   :  { %4145 = vmatpush3.bf16.msra.mxu0 %v408_v17  ;;  %4130 = vmatprep.mubr.msk.bf16.mxu1 %vm135_vm1, %v125_v32  ;;  %v36_v44 = vld [vmem:[%s5699_s0 + $0x8] sm:$0xff]  ;;  %v109_v45 = vld [vmem:[%s5700_s1 + $0xd0] sm:$0xff]  ;;  %v110_v46 = vld [vmem:[%s5700_s1 + $0xd8] sm:$0xff]  ;;  %v122_v48 = vpack.c.bf16 %v98_v41, %v97_v40 }
   0xc   :  { %v4270_v47 = vld [vmem:[%s5704_s5] sm:$0xff]   ;;  %v4271_v49 = vld [vmem:[%s5704_s5 + $0x8] sm:$0xff]   ;;  %v67_v50 = vpack.c.bf16 %v36_v44, %v35_v42  ;;  %v37_v53 = vld [vmem:[%s5699_s0 + $0x10] sm:$0xff]  ;;  %v128_v56 = vpack.c.bf16 %v110_v46, %v109_v45 }
   0xd   :  { %v111_v51 = vld [vmem:[%s5700_s1 + $0xe0] sm:$0xff]  ;;  %4178 = vmatprep.subr.bf16.mxu1 %v4270_v47  ;;  %v112_v52 = vld [vmem:[%s5700_s1 + $0xe8] sm:$0xff]  ;;  %v4272_v54 = vld [vmem:[%s5704_s5 + $0x10] sm:$0xff]  }
   0xe   :  { %4115 = vmatmul.mubr.msk.bf16.gmra.mrb[4].mxu0 %vm135_vm1, %v118_v18  ;;  %4179 = vmatpush3.bf16.msra.mxu1 %v4270_v47  ;;  %v38_v55 = vld [vmem:[%s5699_s0 + $0x18] sm:$0xff]  ;;  %v129_v57 = vpack.c.bf16 %v112_v52, %v111_v51 }
   0xf   :  { %4118 = vmatprep.mubr.msk.bf16.mxu0 %vm135_vm1, %v119_v19  ;;  %4180 = vmatprep.subr.bf16.mxu1 %v4271_v49 }
  0x12   :  { %4131 = vmatmul.mubr.msk.bf16.gmra.mrb[4].mxu1 %vm135_vm1, %v126_v39 }
  0x13   :  { %4134 = vmatprep.mubr.msk.bf16.mxu1 %vm135_vm1, %v127_v43 }
  0x16   :  { %4119 = vmatmul.mubr.msk.bf16.gmra.mrb[8].mxu0 %vm135_vm1, %v120_v33 }
  0x17   :  { %4122 = vmatprep.mubr.msk.bf16.mxu0 %vm135_vm1, %v121_v34 }
  0x1e   :  { %4123 = vmatmul.mubr.msk.bf16.gmra.mrb[12].mxu0 %vm135_vm1, %v122_v48 }
  0x1f   :  { %4146 = vmatprep.mubr.msk.bf16.mxu0 %vm358_vm2, %v67_v50 }
  0x20   :  { %15 = vsyncpa [#allocation4], 0  ;;  %v39_v58 = vld [vmem:[%s5699_s0 + $0x20] sm:$0xff]  ;;  %v40_v59 = vld [vmem:[%s5699_s0 + $0x28] sm:$0xff]  ;;  %4181 = vmatpush3.bf16.msra.mxu1 %v4271_v49  ;;  %v68_v61 = vpack.c.bf16 %v38_v55, %v37_v53  ;;  %vm3790_vm3 = vcmask 130112   ;;  %vm3797_vm4 = vcmask 195712  }
  0x21   :  { %4182 = vmatprep.subr.bf16.mxu1 %v4272_v54  ;;  %v4273_v60 = vld [vmem:[%s5704_s5 + $0x18] sm:$0xff]   ;;  %4135 = vmatmul.mubr.msk.bf16.gmra.mrb[8].mxu1 %vm135_vm1, %v128_v56  ;;  %v69_v62 = vpack.c.bf16 %v40_v59, %v39_v58  ;;  %v113_v63 = vld [vmem:[%s5700_s1 + $0xf0] sm:$0xff]  ;;  %v4274_v1 = vld [vmem:[%s5704_s5 + $0x20] sm:$0xff]   ;;  %vm3804_vm5 = vcmask 261312   ;;  %vm3811_vm6 = vcmask 326912   ;;  %vm3818_vm7 = vcmask 392512  }
  0x22   :  { %4138 = vmatprep.mubr.msk.bf16.mxu1 %vm135_vm1, %v129_v57  ;;  %v114_v0 = vld [vmem:[%s5700_s1 + $0xf8] sm:$0xff]  ;;  %v41_v3 = vld [vmem:[%s5699_s0 + $0x30] sm:$0xff]  ;;  %v43_v5 = vld [vmem:[%s5699_s0 + $0x40] sm:$0xff]  ;;  %vm3825_vm8 = vcmask 458112   ;;  %vm3832_vm9 = vcmask 523712   ;;  %vm3839_vm10 = vcmask 589312  }
  0x23   :  { %v130_v2 = vpack.c.bf16 %v114_v0, %v113_v63  ;;  %v42_v4 = vld [vmem:[%s5699_s0 + $0x38] sm:$0xff]  ;;  %v44_v6 = vld [vmem:[%s5699_s0 + $0x48] sm:$0xff]  ;;  %v45_v10 = vld [vmem:[%s5699_s0 + $0x50] sm:$0xff]  ;;  %vm3846_vm11 = vcmask 654912   ;;  %vm3853_vm12 = vcmask 720512   ;;  %vm3860_vm13 = vcmask 786112  }
  0x24   :  { %4183 = vmatpush3.bf16.msra.mxu1 %v4272_v54  ;;  %v4275_v7 = vld [vmem:[%s5704_s5 + $0x28] sm:$0xff]   ;;  %v70_v8 = vpack.c.bf16 %v42_v4, %v41_v3  ;;  %v71_v9 = vpack.c.bf16 %v44_v6, %v43_v5  ;;  %v46_v11 = vld [vmem:[%s5699_s0 + $0x58] sm:$0xff]  ;;  %v47_v12 = vld [vmem:[%s5699_s0 + $0x60] sm:$0xff]  ;;  %vm3867_vm14 = vcmask 851712   ;;  %vm3874_vm15 = vcmask 917312  }
  0x25   :  { %4184 = vmatprep.subr.bf16.mxu1 %v4273_v60  ;;  %v48_v13 = vld [vmem:[%s5699_s0 + $0x68] sm:$0xff]  ;;  %v72_v14 = vpack.c.bf16 %v46_v11, %v45_v10  ;;  %v49_v16 = vld [vmem:[%s5699_s0 + $0x70] sm:$0xff]  ;;  %v50_v17 = vld [vmem:[%s5699_s0 + $0x78] sm:$0xff]  ;;  %vm3881_vm0 = vcmask 982912  }
  0x26   :  { %4147 = vmatmul.mubr.msk.bf16.vlgmr.msra.gmra.mrb[0].mxu0 %vm358_vm2, %v68_v61  ;;  %v73_v15 = vpack.c.bf16 %v48_v13, %v47_v12  ;;  %v51_v18 = vld [vmem:[%s5699_s0 + $0x80] sm:$0xff]  ;;  %v52_v19 = vld [vmem:[%s5699_s0 + $0x88] sm:$0xff]  ;;  %v74_v20 = vpack.c.bf16 %v50_v17, %v49_v16  ;;  %v53_v22 = vld [vmem:[%s5699_s0 + $0x90] sm:$0xff] }
  0x27   :  { %4150 = vmatprep.mubr.msk.bf16.mxu0 %vm358_vm2, %v69_v62  ;;  %v75_v21 = vpack.c.bf16 %v52_v19, %v51_v18  ;;  %v54_v23 = vld [vmem:[%s5699_s0 + $0x98] sm:$0xff]  ;;  %v55_v24 = vld [vmem:[%s5699_s0 + $0xa0] sm:$0xff]  ;;  %v56_v25 = vld [vmem:[%s5699_s0 + $0xa8] sm:$0xff] }
  0x28   :  { %4185 = vmatpush3.bf16.msra.mxu1 %v4273_v60  ;;  %v76_v26 = vpack.c.bf16 %v54_v23, %v53_v22  ;;  %v77_v27 = vpack.c.bf16 %v56_v25, %v55_v24  ;;  %v57_v28 = vld [vmem:[%s5699_s0 + $0xb0] sm:$0xff]  ;;  %v58_v29 = vld [vmem:[%s5699_s0 + $0xb8] sm:$0xff]  ;;  %v59_v30 = vld [vmem:[%s5699_s0 + $0xc0] sm:$0xff] }
  0x29   :  { %4186 = vmatprep.subr.bf16.mxu1 %v4274_v1  ;;  %4139 = vmatmul.mubr.msk.bf16.gmra.mrb[12].mxu1 %vm135_vm1, %v130_v2  ;;  %v60_v31 = vld [vmem:[%s5699_s0 + $0xc8] sm:$0xff]  ;;  %v78_v32 = vpack.c.bf16 %v58_v29, %v57_v28  ;;  %v61_v34 = vld [vmem:[%s5699_s0 + $0xd0] sm:$0xff]  ;;  %v62_v35 = vld [vmem:[%s5699_s0 + $0xd8] sm:$0xff]  ;;  %vm3888_vm1 = vcmask 1048512  }
  0x2a   :  { %v79_v33 = vpack.c.bf16 %v60_v31, %v59_v30  ;;  %v63_v36 = vld [vmem:[%s5699_s0 + $0xe0] sm:$0xff]  ;;  %v64_v37 = vld [vmem:[%s5699_s0 + $0xe8] sm:$0xff]  ;;  %v80_v38 = vpack.c.bf16 %v62_v35, %v61_v34  ;;  %v65_v40 = vld [vmem:[%s5699_s0 + $0xf0] sm:$0xff] }
  0x2b   :  { %v81_v39 = vpack.c.bf16 %v64_v37, %v63_v36  ;;  %v66_v41 = vld [vmem:[%s5699_s0 + $0xf8] sm:$0xff]  ;;  %v4276_v43 = vld [vmem:[%s5704_s5 + $0x30] sm:$0xff]   ;;  %v4640_v55 = vld [vmem:[%s5703_s4] ss:$0 sm:$0xff] }
  0x2c   :  { %4187 = vmatpush3.bf16.msra.mxu1 %v4274_v1  ;;  %v82_v42 = vpack.c.bf16 %v66_v41, %v65_v40  ;;  %v4277_v44 = vld [vmem:[%s5704_s5 + $0x38] sm:$0xff]  }
  0x2d   :  { %4188 = vmatprep.subr.bf16.mxu1 %v4275_v7 }
  0x2e   :  { %4151 = vmatmul.mubr.msk.bf16.gmra.mrb[4].mxu0 %vm358_vm2, %v70_v8 }
  0x2f   :  { %4154 = vmatprep.mubr.msk.bf16.mxu0 %vm358_vm2, %v71_v9 }
  0x30   :  { %4189 = vmatpush3.bf16.msra.mxu1 %v4275_v7 }
  0x31   :  { %4190 = vmatprep.subr.bf16.mxu1 %v4276_v43 }
  0x34   :  { %4191 = vmatpush3.bf16.msra.mxu1 %v4276_v43 }
  0x35   :  { %4192 = vmatprep.subr.bf16.mxu1 %v4277_v44 }
  0x36   :  { %4155 = vmatmul.mubr.msk.bf16.gmra.mrb[8].mxu0 %vm358_vm2, %v72_v14 }
  0x37   :  { %4158 = vmatprep.mubr.msk.bf16.mxu0 %vm358_vm2, %v73_v15 }
  0x38   :  { %4193 = vmatpush3.bf16.msra.mxu1 %v4277_v44 }
  0x3e   :  { %4159 = vmatmul.mubr.msk.bf16.gmra.mrb[12].mxu0 %vm358_vm2, %v74_v20 }
  0x3f   :  { %4162 = vmatprep.mubr.msk.bf16.mxu0 %vm358_vm2, %v75_v21 }
  0x46   :  { %4163 = vmatmul.mubr.msk.bf16.gmra.mrb[16].mxu0 %vm358_vm2, %v76_v26 }
  0x47   :  { %4166 = vmatprep.mubr.msk.bf16.mxu0 %vm358_vm2, %v77_v27 }
  0x4e   :  { %4167 = vmatmul.mubr.msk.bf16.gmra.mrb[20].mxu0 %vm358_vm2, %v78_v32 }
  0x4f   :  { %4170 = vmatprep.mubr.msk.bf16.mxu0 %vm358_vm2, %v79_v33 }
  0x56   :  { %4171 = vmatmul.mubr.msk.bf16.gmra.mrb[24].mxu0 %vm358_vm2, %v80_v38 }
  0x57   :  { %4174 = vmatprep.mubr.msk.bf16.mxu0 %vm358_vm2, %v81_v39 }
  0x5e   :  { %4175 = vmatmul.mubr.msk.bf16.gmra.mrb[28].mxu0 %vm358_vm2, %v82_v42 }
  0xdd   :  { %v4617_v45 = vpop.f32.mrb[0].mxu1 }
  0xde   :  { %v4619_v46 = vpop.f32.mrb[1].mxu1 }
  0xdf   :  { %v4621_v47 = vpop.f32.mrb[2].mxu1 }
  0xe0   :  { %v4623_v48 = vpop.f32.mrb[3].mxu1 }
  0xe5   :  { %v4625_v49 = vpop.f32.mrb[4].mxu1 }
  0xe6   :  { %v4627_v50 = vpop.f32.mrb[5].mxu1 }
  0xe7   :  { %v4629_v51 = vpop.f32.mrb[6].mxu1 }
  0xe8   :  { %v4631_v52 = vpop.f32.mrb[7].mxu1 }
  0xf4   :  { %v4633_v53 = vpop.f32.mrb[8].mxu1 }
  0xf5   :  { %v4635_v54 = vpop.f32.mrb[9].mxu1 }
  0xf6   :  { %v4642_v56 = vpop.f32.mrb[10].mxu1 }
  0xf7   :  { %v4644_v57 = vpop.f32.mrb[11].mxu1 }
  0xf9   :  { %v4148_v58 = vpop.f32.mrb[0].mxu0 }
  0xfa   :  { %v580_v59 = vadd.f32 %v4148_v58, %v4640_v55  ;;  %v444_v60 = vpop.f32.mrb[1].mxu0 }
  0xfb   :  { %v578_v61 = vadd.f32 %v4640_v55, %v444_v60  ;;  %v4149_v62 = vpop.f32.mrb[2].mxu0 }
  0xfc   :  { %v581_v63 = vadd.f32 %v4149_v62, %v4640_v55  ;;  %v447_v0 = vpop.f32.mrb[3].mxu0  ;;  %v4650_v2 = vpop.f32.mrb[12].mxu1  ;;  %v612_v3 = vmax.f32 %v580_v59, 0.0 }
  0xfd   :  { %v579_v1 = vadd.f32 %v4640_v55, %v447_v0  ;;  %v4652_v5 = vpop.f32.mrb[13].mxu1  ;;  %v610_v6 = vmax.f32 %v578_v61, 0.0 }
  0xfe   :  { %v613_v4 = vmax.f32 %v581_v63, 0.0  ;;  %v4654_v8 = vpop.f32.mrb[14].mxu1 }
  0xff   :  { %v611_v7 = vmax.f32 %v579_v1, 0.0  ;;  %v4656_v10 = vpop.f32.mrb[15].mxu1 }
 0x100   :  { %v643_v9 = vpack.c.bf16 %v613_v4, %v612_v3 }
 0x101   :  { %v642_v11 = vpack.c.bf16 %v611_v7, %v610_v6  ;;  %v4152_v12 = vpop.f32.mrb[4].mxu0 }
 0x102   :  { %v584_v13 = vadd.f32 %v4152_v12, %v4640_v55  ;;  %v460_v14 = vpop.f32.mrb[5].mxu0 }
 0x103   :  { %v582_v15 = vadd.f32 %v4640_v55, %v460_v14  ;;  %v4153_v16 = vpop.f32.mrb[6].mxu0  ;;  %4194 = vmatprep.mubr.bf16.mxu1 %v642_v11 }
 0x104   :  { %v585_v17 = vadd.f32 %v4153_v16, %v4640_v55  ;;  %v463_v18 = vpop.f32.mrb[7].mxu0  ;;  %4195 = vmatmul.mubr.bf16.vlgmr.msra.gmra.mrb[16].mxu1 %v643_v9  ;;  %v616_v20 = vmax.f32 %v584_v13, 0.0 }
 0x105   :  { %v583_v19 = vadd.f32 %v4640_v55, %v463_v18  ;;  %v614_v22 = vmax.f32 %v582_v15, 0.0 }
 0x106   :  { %v617_v21 = vmax.f32 %v585_v17, 0.0 }
 0x107   :  { %v615_v23 = vmax.f32 %v583_v19, 0.0 }
 0x108   :  { %v645_v24 = vpack.c.bf16 %v617_v21, %v616_v20 }
 0x109   :  { %v644_v25 = vpack.c.bf16 %v615_v23, %v614_v22  ;;  %v4156_v26 = vpop.f32.mrb[8].mxu0 }
 0x10a   :  { %v588_v27 = vadd.f32 %v4156_v26, %v4640_v55  ;;  %v476_v28 = vpop.f32.mrb[9].mxu0 }
 0x10b   :  { %v586_v29 = vadd.f32 %v4640_v55, %v476_v28  ;;  %v4157_v30 = vpop.f32.mrb[10].mxu0  ;;  %4198 = vmatprep.mubr.bf16.mxu1 %v644_v25 }
 0x10c   :  { %v589_v31 = vadd.f32 %v4157_v30, %v4640_v55  ;;  %v479_v32 = vpop.f32.mrb[11].mxu0  ;;  %4199 = vmatmul.mubr.bf16.gmra.mrb[20].mxu1 %v645_v24  ;;  %v620_v34 = vmax.f32 %v588_v27, 0.0 }
 0x10d   :  { %v587_v33 = vadd.f32 %v4640_v55, %v479_v32  ;;  %v618_v36 = vmax.f32 %v586_v29, 0.0 }
 0x10e   :  { %v621_v35 = vmax.f32 %v589_v31, 0.0 }
 0x10f   :  { %v619_v37 = vmax.f32 %v587_v33, 0.0 }
 0x110   :  { %v647_v38 = vpack.c.bf16 %v621_v35, %v620_v34 }
 0x111   :  { %v646_v39 = vpack.c.bf16 %v619_v37, %v618_v36  ;;  %v4160_v40 = vpop.f32.mrb[12].mxu0 }
 0x112   :  { %v592_v41 = vadd.f32 %v4160_v40, %v4640_v55  ;;  %v492_v42 = vpop.f32.mrb[13].mxu0 }
 0x113   :  { %v590_v43 = vadd.f32 %v4640_v55, %v492_v42  ;;  %v4161_v44 = vpop.f32.mrb[14].mxu0  ;;  %4202 = vmatprep.mubr.bf16.mxu1 %v646_v39 }
 0x114   :  { %v593_v58 = vadd.f32 %v4161_v44, %v4640_v55  ;;  %v495_v59 = vpop.f32.mrb[15].mxu0  ;;  %4203 = vmatmul.mubr.bf16.gmra.mrb[24].mxu1 %v647_v38  ;;  %v624_v61 = vmax.f32 %v592_v41, 0.0 }
 0x115   :  { %v591_v60 = vadd.f32 %v4640_v55, %v495_v59  ;;  %v622_v63 = vmax.f32 %v590_v43, 0.0 }
 0x116   :  { %v625_v62 = vmax.f32 %v593_v58, 0.0 }
 0x117   :  { %v623_v0 = vmax.f32 %v591_v60, 0.0 }
 0x118   :  { %v649_v1 = vpack.c.bf16 %v625_v62, %v624_v61 }
 0x119   :  { %v648_v3 = vpack.c.bf16 %v623_v0, %v622_v63  ;;  %v4164_v4 = vpop.f32.mrb[16].mxu0 }
 0x11a   :  { %v517_v6 = vadd.f32 %v4164_v4, %v4617_v45  ;;  %v508_v7 = vpop.f32.mrb[17].mxu0 }
 0x11b   :  { %v509_v9 = vadd.f32 %v508_v7, %v4619_v46  ;;  %v4165_v11 = vpop.f32.mrb[18].mxu0  ;;  %4206 = vmatprep.mubr.bf16.mxu1 %v648_v3 }
 0x11c   :  { %v596_v12 = vadd.f32 %v4640_v55, %v517_v6  ;;  %v520_v13 = vadd.f32 %v4165_v11, %v4621_v47  ;;  %v511_v14 = vpop.f32.mrb[19].mxu0  ;;  %4207 = vmatmul.mubr.bf16.gmra.mrb[28].mxu1 %v649_v1 }
 0x11d   :  { %v594_v15 = vadd.f32 %v4640_v55, %v509_v9  ;;  %v512_v16 = vadd.f32 %v511_v14, %v4623_v48 }
 0x11e   :  { %v597_v17 = vadd.f32 %v4640_v55, %v520_v13  ;;  %v628_v45 = vmax.f32 %v596_v12, 0.0 }
 0x11f   :  { %v595_v18 = vadd.f32 %v4640_v55, %v512_v16  ;;  %v626_v20 = vmax.f32 %v594_v15, 0.0 }
 0x120   :  { %v629_v19 = vmax.f32 %v597_v17, 0.0 }
 0x121   :  { %v627_v46 = vmax.f32 %v595_v18, 0.0  ;;  %v4168_v21 = vpop.f32.mrb[20].mxu0 }
 0x122   :  { %v533_v22 = vadd.f32 %v4168_v21, %v4625_v49  ;;  %v524_v23 = vpop.f32.mrb[21].mxu0  ;;  %v651_v24 = vpack.c.bf16 %v629_v19, %v628_v45 }
 0x123   :  { %v525_v47 = vadd.f32 %v524_v23, %v4627_v50  ;;  %v4169_v25 = vpop.f32.mrb[22].mxu0  ;;  %v650_v26 = vpack.c.bf16 %v627_v46, %v626_v20 }
 0x124   :  { %v600_v27 = vadd.f32 %v4640_v55, %v533_v22  ;;  %v536_v48 = vadd.f32 %v4169_v25, %v4629_v51  ;;  %v527_v28 = vpop.f32.mrb[23].mxu0 }
 0x125   :  { %v598_v29 = vadd.f32 %v4640_v55, %v525_v47  ;;  %v528_v30 = vadd.f32 %v527_v28, %v4631_v52  ;;  %4210 = vmatprep.mubr.bf16.mxu1 %v650_v26 }
 0x126   :  { %v601_v31 = vadd.f32 %v4640_v55, %v536_v48  ;;  %4211 = vmatmul.mubr.bf16.gmra.mrb[32].mxu1 %v651_v24  ;;  %v632_v32 = vmax.f32 %v600_v27, 0.0 }
 0x127   :  { %v599_v49 = vadd.f32 %v4640_v55, %v528_v30  ;;  %v630_v50 = vmax.f32 %v598_v29, 0.0 }
 0x128   :  { %v633_v33 = vmax.f32 %v601_v31, 0.0 }
 0x129   :  { %v631_v34 = vmax.f32 %v599_v49, 0.0  ;;  %v4172_v35 = vpop.f32.mrb[24].mxu0 }
 0x12a   :  { %v549_v36 = vadd.f32 %v4172_v35, %v4633_v53  ;;  %v540_v37 = vpop.f32.mrb[25].mxu0  ;;  %v653_v51 = vpack.c.bf16 %v633_v33, %v632_v32 }
 0x12b   :  { %v541_v38 = vadd.f32 %v540_v37, %v4635_v54  ;;  %v4173_v39 = vpop.f32.mrb[26].mxu0  ;;  %v652_v40 = vpack.c.bf16 %v631_v34, %v630_v50 }
 0x12c   :  { %v604_v52 = vadd.f32 %v4640_v55, %v549_v36  ;;  %v552_v41 = vadd.f32 %v4173_v39, %v4642_v56  ;;  %v543_v42 = vpop.f32.mrb[27].mxu0 }
 0x12d   :  { %v602_v43 = vadd.f32 %v4640_v55, %v541_v38  ;;  %v544_v44 = vadd.f32 %v543_v42, %v4644_v57  ;;  %4214 = vmatprep.mubr.bf16.mxu1 %v652_v40 }
 0x12e   :  { %v636_v58 = vmax.f32 %v604_v52, 0.0  ;;  %v605_v59 = vadd.f32 %v4640_v55, %v552_v41  ;;  %4215 = vmatmul.mubr.bf16.gmra.mrb[36].mxu1 %v653_v51 }
 0x12f   :  { %v603_v53 = vadd.f32 %v4640_v55, %v544_v44  ;;  %v634_v54 = vmax.f32 %v602_v43, 0.0 }
 0x130   :  { %v637_v60 = vmax.f32 %v605_v59, 0.0 }
 0x131   :  { %v635_v61 = vmax.f32 %v603_v53, 0.0  ;;  %v4176_v62 = vpop.f32.mrb[28].mxu0 }
 0x132   :  { %v565_v63 = vadd.f32 %v4176_v62, %v4650_v2  ;;  %v556_v0 = vpop.f32.mrb[29].mxu0  ;;  %v655_v56 = vpack.c.bf16 %v637_v60, %v636_v58 }
 0x133   :  { %v557_v1 = vadd.f32 %v556_v0, %v4652_v5  ;;  %v4177_v3 = vpop.f32.mrb[30].mxu0  ;;  %v654_v4 = vpack.c.bf16 %v635_v61, %v634_v54 }
 0x134   :  { %v608_v57 = vadd.f32 %v4640_v55, %v565_v63  ;;  %v568_v6 = vadd.f32 %v4177_v3, %v4654_v8  ;;  %v559_v7 = vpop.f32.mrb[31].mxu0  ;;  %v4705_v8 = vld [vmem:[%s5705_s6] ss:$0 sm:$0xff] }
 0x135   :  { %v606_v9 = vadd.f32 %v4640_v55, %v557_v1  ;;  %v560_v11 = vadd.f32 %v559_v7, %v4656_v10  ;;  %4218 = vmatprep.mubr.bf16.mxu1 %v654_v4 }
 0x136   :  { %v640_v12 = vmax.f32 %v608_v57, 0.0  ;;  %v609_v13 = vadd.f32 %v4640_v55, %v568_v6  ;;  %4219 = vmatmul.mubr.bf16.gmra.mrb[40].mxu1 %v655_v56 }
 0x137   :  { %v607_v2 = vadd.f32 %v4640_v55, %v560_v11  ;;  %v638_v5 = vmax.f32 %v606_v9, 0.0  ;;  %v4712_v55 = vld [vmem:[%s5706_s7] ss:$0 sm:$0xff] }
 0x138   :  { %v641_v14 = vmax.f32 %v609_v13, 0.0 }
 0x139   :  { %v639_v15 = vmax.f32 %v607_v2, 0.0 }
 0x13a   :  { %v657_v16 = vpack.c.bf16 %v641_v14, %v640_v12 }
 0x13b   :  { %v656_v17 = vpack.c.bf16 %v639_v15, %v638_v5 }
 0x13d   :  { %4222 = vmatprep.mubr.bf16.mxu1 %v656_v17 }
 0x13e   :  { %4223 = vmatmul.mubr.bf16.gmra.mrb[44].mxu1 %v657_v16 }
 0x1d7   :  { %v4196_v10 = vpop.f32.mrb[16].mxu1 }
 0x1d8   :  { %v772_v18 = vadd.f32 %v4196_v10, %v4705_v8  ;;  %v763_v45 = vpop.f32.mrb[17].mxu1 }
 0x1d9   :  { %v764_v19 = vadd.f32 %v4705_v8, %v763_v45  ;;  %v4197_v20 = vpop.f32.mrb[18].mxu1  ;;  %v4302_v45 = vmov 0  }
 0x1da   :  { %v892_v46 = vmax.f32 %v772_v18, 0.0  ;;  %v775_v21 = vadd.f32 %v4197_v20, %v4705_v8  ;;  %v766_v22 = vpop.f32.mrb[19].mxu1  ;;  %4266 = vset.pattern.permute.xlu1 %v4302_v45  ;;  %4267 = vset.pattern.permute.xlu0 %v4302_v45 }
 0x1db   :  { %v890_v23 = vmax.f32 %v764_v19, 0.0  ;;  %v767_v24 = vadd.f32 %v4705_v8, %v766_v22 }
 0x1dc   :  { %v893_v47 = vmax.f32 %v775_v21, 0.0  ;;  %v931_v25 = vmul.f32 %v4712_v55, %v892_v46 }
 0x1dd   :  { %v891_v26 = vmax.f32 %v767_v24, 0.0  ;;  %v929_v27 = vmul.f32 %v4712_v55, %v890_v23 }
 0x1de   :  { %965 = vadd.xlane.f32.xlu1 %v931_v25  ;;  %v932_v30 = vmul.f32 %v4712_v55, %v893_v47 }
 0x1df   :  { %961 = vadd.xlane.f32.xlu0 %v929_v27  ;;  %v4200_v48 = vpop.f32.mrb[20].mxu1  ;;  %v930_v32 = vmul.f32 %v4712_v55, %v891_v26 }
 0x1e0   :  { %v788_v28 = vadd.f32 %v4200_v48, %v4705_v8  ;;  %v779_v29 = vpop.f32.mrb[21].mxu1 }
 0x1e1   :  { %v780_v31 = vadd.f32 %v4705_v8, %v779_v29  ;;  %v4201_v49 = vpop.f32.mrb[22].mxu1 }
 0x1e2   :  { %v896_v33 = vmax.f32 %v788_v28, 0.0  ;;  %v791_v50 = vadd.f32 %v4201_v49, %v4705_v8  ;;  %967 = vadd.xlane.f32.xlu1 %v932_v30  ;;  %v782_v34 = vpop.f32.mrb[23].mxu1 }
 0x1e3   :  { %v783_v35 = vadd.f32 %v4705_v8, %v782_v34  ;;  %963 = vadd.xlane.f32.xlu0 %v930_v32  ;;  %v894_v51 = vmax.f32 %v780_v31, 0.0 }
 0x1e4   :  { %v897_v36 = vmax.f32 %v791_v50, 0.0  ;;  %v935_v37 = vmul.f32 %v4712_v55, %v896_v33 }
 0x1e5   :  { %v895_v38 = vmax.f32 %v783_v35, 0.0  ;;  %v933_v44 = vmul.f32 %v4712_v55, %v894_v51 }
 0x1e6   :  { %v936_v39 = vmul.f32 %v4712_v55, %v897_v36 }
 0x1e7   :  { %973 = vadd.xlane.f32.xlu0 %v935_v37  ;;  %v4204_v40 = vpop.f32.mrb[24].mxu1  ;;  %v934_v60 = vmul.f32 %v4712_v55, %v895_v38 }
 0x1e8   :  { %v804_v52 = vadd.f32 %v4204_v40, %v4705_v8  ;;  %975 = vadd.xlane.f32.xlu1 %v936_v39  ;;  %v795_v41 = vpop.f32.mrb[25].mxu1 }
 0x1e9   :  { %v796_v42 = vadd.f32 %v4705_v8, %v795_v41  ;;  %v4205_v43 = vpop.f32.mrb[26].mxu1 }
 0x1ea   :  { %v900_v58 = vmax.f32 %v804_v52, 0.0  ;;  %v807_v59 = vadd.f32 %v4205_v43, %v4705_v8  ;;  %v798_v53 = vpop.f32.mrb[27].mxu1 }
 0x1eb   :  { %v799_v54 = vadd.f32 %v4705_v8, %v798_v53  ;;  %969 = vadd.xlane.f32.xlu0 %v933_v44  ;;  %v898_v63 = vmax.f32 %v796_v42, 0.0 }
 0x1ec   :  { %v901_v61 = vmax.f32 %v807_v59, 0.0  ;;  %971 = vadd.xlane.f32.xlu1 %v934_v60  ;;  %v939_v62 = vmul.f32 %v4712_v55, %v900_v58 }
 0x1ed   :  { %v899_v0 = vmax.f32 %v799_v54, 0.0  ;;  %v937_v7 = vmul.f32 %v4712_v55, %v898_v63 }
 0x1ee   :  { %v940_v56 = vmul.f32 %v4712_v55, %v901_v61 }
 0x1ef   :  { %981 = vadd.xlane.f32.xlu0 %v939_v62  ;;  %v4208_v1 = vpop.f32.mrb[28].mxu1  ;;  %v938_v13 = vmul.f32 %v4712_v55, %v899_v0 }
 0x1f0   :  { %v820_v3 = vadd.f32 %v4208_v1, %v4705_v8  ;;  %983 = vadd.xlane.f32.xlu1 %v940_v56  ;;  %v811_v4 = vpop.f32.mrb[29].mxu1 }
 0x1f1   :  { %v812_v57 = vadd.f32 %v4705_v8, %v811_v4  ;;  %v4209_v6 = vpop.f32.mrb[30].mxu1 }
 0x1f2   :  { %v904_v9 = vmax.f32 %v820_v3, 0.0  ;;  %v823_v11 = vadd.f32 %v4209_v6, %v4705_v8  ;;  %v814_v12 = vpop.f32.mrb[31].mxu1 }
 0x1f3   :  { %v815_v2 = vadd.f32 %v4705_v8, %v814_v12  ;;  %977 = vadd.xlane.f32.xlu0 %v937_v7  ;;  %v902_v15 = vmax.f32 %v812_v57, 0.0 }
 0x1f4   :  { %v905_v14 = vmax.f32 %v823_v11, 0.0  ;;  %979 = vadd.xlane.f32.xlu1 %v938_v13  ;;  %v943_v5 = vmul.f32 %v4712_v55, %v904_v9 }
 0x1f5   :  { %v903_v16 = vmax.f32 %v815_v2, 0.0  ;;  %v941_v18 = vmul.f32 %v4712_v55, %v902_v15 }
 0x1f6   :  { %v944_v17 = vmul.f32 %v4712_v55, %v905_v14 }
 0x1f7   :  { %989 = vadd.xlane.f32.xlu0 %v943_v5  ;;  %v942_v46 = vmul.f32 %v4712_v55, %v903_v16 }
 0x1f8   :  { %991 = vadd.xlane.f32.xlu1 %v944_v17 }
 0x1f9   :  { %v4212_v10 = vpop.f32.mrb[32].mxu1 }
 0x1fa   :  { %v836_v19 = vadd.f32 %v4212_v10, %v4705_v8  ;;  %v827_v20 = vpop.f32.mrb[33].mxu1 }
 0x1fb   :  { %v828_v21 = vadd.f32 %v4705_v8, %v827_v20  ;;  %985 = vadd.xlane.f32.xlu0 %v941_v18  ;;  %v4213_v22 = vpop.f32.mrb[34].mxu1 }
 0x1fc   :  { %v908_v23 = vmax.f32 %v836_v19, 0.0  ;;  %v839_v24 = vadd.f32 %v4213_v22, %v4705_v8  ;;  %987 = vadd.xlane.f32.xlu1 %v942_v46  ;;  %v830_v47 = vpop.f32.mrb[35].mxu1  ;;  %v1091_v46 = vlaneseq }
 0x1fd   :  { %v831_v25 = vadd.f32 %v4705_v8, %v830_v47  ;;  %v906_v26 = vmax.f32 %v828_v21, 0.0  ;;  %v4303_v21 = vmov 1966171168  }
 0x1fe   :  { %v909_v27 = vmax.f32 %v839_v24, 0.0  ;;  %v947_v48 = vmul.f32 %v4712_v55, %v908_v23  ;;  %v2120_v22 = vunpack.c.l.s4 %v4303_v21  ;;  %v4782_v23 = vstv %s5707_s8  ;;  %s4304_s8 = smov [#allocation3]  }
 0x1ff   :  { %v907_v28 = vmax.f32 %v831_v25, 0.0  ;;  %v945_v32 = vmul.f32 %v4712_v55, %v906_v26  ;;  %s3996_s20 = sshll.u32 %s4304_s8, 4  ;;  %vm3987_vm2 = vcmp.lt.s32.totalorder %v1091_v46, 256  ;;  %s3997_s20 = int_to_ptr.vmem [resolvable:$true] %s3996_s20 }
 0x200   :  { %997 = vadd.xlane.f32.xlu0 %v947_v48  ;;  %v948_v29 = vmul.f32 %v4712_v55, %v909_v27  ;;  %v2121_v24 = vunpack.c.0.s8 %v2120_v22  ;;  %s4278_s21 = scalar_lea.vmem %s3997_s20, 32  ;;  %p4283_p1 = scmp.lt.s32.totalorder %s3997_s20, %s3997_s20 }
 0x201   :  { %v4216_v30 = vpop.f32.mrb[36].mxu1  ;;  %v946_v37 = vmul.f32 %v4712_v55, %v907_v28  ;;  %p4279_p0 = scmp.ne.s32.totalorder %s3997_s20, %s4278_s21  ;;  %p4284_p2 = scmp.lt.s32.totalorder %s4278_s21, %s4278_s21 }
 0x202   :  { %v852_v31 = vadd.f32 %v4216_v30, %v4705_v8  ;;  %999 = vadd.xlane.f32.xlu1 %v948_v29  ;;  %v843_v49 = vpop.f32.mrb[37].mxu1 }
 0x203   :  { %v844_v33 = vadd.f32 %v4705_v8, %v843_v49  ;;  %v4217_v50 = vpop.f32.mrb[38].mxu1  ;;  %p4285_p3 = por %p4284_p2, %p4283_p1 }
 0x204   :  { %v912_v34 = vmax.f32 %v852_v31, 0.0  ;;  %v855_v35 = vadd.f32 %v4217_v50, %v4705_v8  ;;  %v846_v36 = vpop.f32.mrb[39].mxu1  ;;  %993 = vadd.xlane.f32.xlu0 %v945_v32 }
 0x205   :  { %v847_v51 = vadd.f32 %v4705_v8, %v846_v36  ;;  %v910_v38 = vmax.f32 %v844_v33, 0.0  ;;  %p4286_p4 = pnand %p4285_p3, %p4279_p0 }
 0x206   :  { %v913_v39 = vmax.f32 %v855_v35, 0.0  ;;  %995 = vadd.xlane.f32.xlu1 %v946_v37  ;;  %v951_v40 = vmul.f32 %v4712_v55, %v912_v34 }
 0x207   :  { %v911_v52 = vmax.f32 %v847_v51, 0.0  ;;  %v949_v58 = vmul.f32 %v4712_v55, %v910_v38 }
 0x208   :  { %1005 = vadd.xlane.f32.xlu0 %v951_v40  ;;  %v952_v41 = vmul.f32 %v4712_v55, %v913_v39 }
 0x209   :  { %v4220_v42 = vpop.f32.mrb[40].mxu1  ;;  %v950_v62 = vmul.f32 %v4712_v55, %v911_v52 }
 0x20a   :  { %v868_v43 = vadd.f32 %v4220_v42, %v4705_v8  ;;  %v859_v44 = vpop.f32.mrb[41].mxu1  ;;  %1007 = vadd.xlane.f32.xlu1 %v952_v41 }
 0x20b   :  { %v860_v59 = vadd.f32 %v4705_v8, %v859_v44  ;;  %v4221_v53 = vpop.f32.mrb[42].mxu1 }
 0x20c   :  { %v916_v60 = vmax.f32 %v868_v43, 0.0  ;;  %v871_v54 = vadd.f32 %v4221_v53, %v4705_v8  ;;  %v862_v61 = vpop.f32.mrb[43].mxu1  ;;  %1001 = vadd.xlane.f32.xlu0 %v949_v58 }
 0x20d   :  { %v863_v63 = vadd.f32 %v4705_v8, %v862_v61  ;;  %v914_v0 = vmax.f32 %v860_v59, 0.0 }
 0x20e   :  { %v917_v56 = vmax.f32 %v871_v54, 0.0  ;;  %1003 = vadd.xlane.f32.xlu1 %v950_v62  ;;  %v955_v1 = vmul.f32 %v4712_v55, %v916_v60 }
 0x20f   :  { %v915_v3 = vmax.f32 %v863_v63, 0.0  ;;  %v953_v7 = vmul.f32 %v4712_v55, %v914_v0 }
 0x210   :  { %1013 = vadd.xlane.f32.xlu0 %v955_v1  ;;  %v956_v4 = vmul.f32 %v4712_v55, %v917_v56 }
 0x211   :  { %v4224_v57 = vpop.f32.mrb[44].mxu1  ;;  %v954_v14 = vmul.f32 %v4712_v55, %v915_v3 }
 0x212   :  { %v875_v6 = vpop.f32.mrb[45].mxu1  ;;  %1015 = vadd.xlane.f32.xlu1 %v956_v4  ;;  %v884_v9 = vadd.f32 %v4224_v57, %v4705_v8 }
 0x213   :  { %v876_v11 = vadd.f32 %v4705_v8, %v875_v6  ;;  %v4225_v12 = vpop.f32.mrb[46].mxu1 }
 0x214   :  { %v887_v13 = vadd.f32 %v4225_v12, %v4705_v8  ;;  %v878_v2 = vpop.f32.mrb[47].mxu1  ;;  %1009 = vadd.xlane.f32.xlu0 %v953_v7  ;;  %v920_v17 = vmax.f32 %v884_v9, 0.0 }
 0x215   :  { %v918_v5 = vmax.f32 %v876_v11, 0.0  ;;  %v879_v15 = vadd.f32 %v4705_v8, %v878_v2  ;;  %v4777_v8 = vshrl.u32 %v1091_v46, 7 }
 0x216   :  { %v921_v16 = vmax.f32 %v887_v13, 0.0  ;;  %1011 = vadd.xlane.f32.xlu1 %v954_v14  ;;  %v959_v20 = vmul.f32 %v4712_v55, %v920_v17 }
 0x217   :  { %v919_v10 = vmax.f32 %v879_v15, 0.0  ;;  %v957_v18 = vmul.f32 %v4712_v55, %v918_v5  ;;  %v4785_v47 = vsub.s32 0, %v4777_v8  ;;  %v4788_v25 = vsub.s32 1, %v4777_v8 }
 0x218   :  { %v960_v45 = vmul.f32 %v4712_v55, %v921_v16  ;;  %v4794_v26 = vsub.s32 3, %v4777_v8  ;;  %v4797_v48 = vsub.s32 4, %v4777_v8  ;;  %v4800_v28 = vsub.s32 5, %v4777_v8 }
 0x219   :  { %1017 = vadd.xlane.f32.xlu0 %v957_v18  ;;  %v958_v19 = vmul.f32 %v4712_v55, %v919_v10  ;;  %v4791_v55 = vsub.s32 2, %v4777_v8  ;;  %v4803_v29 = vsub.s32 6, %v4777_v8  ;;  %v4806_v30 = vsub.s32 7, %v4777_v8 }
 0x21a   :  { %1023 = vadd.xlane.f32.xlu1 %v960_v45  ;;  %v4811_v33 = vsub.s32 %v2121_v24, %v4777_v8 }
 0x21d   :  { %1021 = vadd.xlane.f32.xlu0 %v959_v20 }
 0x21e   :  { %1019 = vadd.xlane.f32.xlu1 %v958_v19 }
 0x26b   :  { %v966_v27 = vpop.xlane.xlu1 %965 }
 0x26c   :  { %v1029_v31 = vadd.f32 %v4782_v23, %v966_v27  ;;  %v962_v49 = vpop.xlane.xlu0 %961 }
 0x26d   :  { %v1027_v32 = vadd.f32 %v4782_v23, %v962_v49 }
 0x26e   :  { %v1158_v50 = vrot.slane %v1029_v31, %v4785_v47  ;;  %v1162_v34 = vrot.slane %v1029_v31, %v4788_v25  ;;  %v1166_v35 = vrot.slane %v1029_v31, %v4791_v55  ;;  %v1170_v36 = vrot.slane %v1029_v31, %v4794_v26 }
 0x26f   :  { %v968_v37 = vpop.xlane.xlu1 %967  ;;  %v1174_v51 = vrot.slane %v1029_v31, %v4797_v48  ;;  %v1178_v38 = vrot.slane %v1029_v31, %v4800_v28  ;;  %v1182_v39 = vrot.slane %v1029_v31, %v4803_v29  ;;  %v1186_v40 = vrot.slane %v1029_v31, %v4806_v30 }
 0x270   :  { %v1030_v52 = vadd.f32 %v4782_v23, %v968_v37  ;;  %v964_v41 = vpop.xlane.xlu0 %963  ;;  %v2213_v42 = vcombine.low %v1158_v50, %v1162_v34  ;;  %v2214_v43 = vcombine.low %v1166_v35, %v1170_v36  ;;  %v1094_v44 = vrot.slane %v1027_v32, %v4785_v47 }
 0x271   :  { %v4824_v58 = vadd.f32 %v4782_v23, %v964_v41  ;;  %v2215_v59 = vcombine.low %v1174_v51, %v1178_v38  ;;  %v2216_v53 = vcombine.low %v1182_v39, %v1186_v40  ;;  %v1098_v60 = vrot.slane %v1027_v32, %v4788_v25 }
 0x272   :  { %v2223_v54 = vrot.slane %v2213_v42, %v4811_v33  ;;  %v2230_v61 = vrot.slane %v2214_v43, %v4811_v33  ;;  %v1102_v62 = vrot.slane %v1027_v32, %v4791_v55  ;;  %v1106_v63 = vrot.slane %v1027_v32, %v4794_v26 }
 0x273   :  { %v2237_v0 = vrot.slane %v2215_v59, %v4811_v33  ;;  %v2244_v56 = vrot.slane %v2216_v53, %v4811_v33  ;;  %v1110_v1 = vrot.slane %v1027_v32, %v4797_v48  ;;  %v1114_v3 = vrot.slane %v1027_v32, %v4800_v28 }
 0x274   :  { %v974_v4 = vpop.xlane.xlu0 %973  ;;  %v2245_v57 = vcombine.low %v2223_v54, %v2230_v61  ;;  %v1118_v6 = vrot.slane %v1027_v32, %v4803_v29  ;;  %v1122_v7 = vrot.slane %v1027_v32, %v4806_v30  ;;  %v2115_v9 = vcombine.low %v1094_v44, %v1098_v60 }
 0x275   :  { %v4838_v11 = vadd.f32 %v4782_v23, %v974_v4  ;;  %v976_v12 = vpop.xlane.xlu1 %975  ;;  %v2246_v13 = vcombine.low %v2237_v0, %v2244_v56  ;;  %v2116_v2 = vcombine.low %v1102_v62, %v1106_v63  ;;  %v2117_v14 = vcombine.low %v1110_v1, %v1114_v3 }
 0x276   :  { %v4841_v5 = vadd.f32 %v4782_v23, %v976_v12  ;;  %v2253_v15 = vrot.slane %v2245_v57, %v4811_v33  ;;  %v2118_v16 = vcombine.low %v1118_v6, %v1122_v7  ;;  %v2125_v17 = vrot.slane %v2115_v9, %v4811_v33 }
 0x277   :  { %v2260_v10 = vrot.slane %v2246_v13, %v4811_v33  ;;  %v2132_v18 = vrot.slane %v2116_v2, %v4811_v33  ;;  %v2139_v45 = vrot.slane %v2117_v14, %v4811_v33  ;;  %v1190_v19 = vrot.slane %v1030_v52, %v4785_v47 }
 0x278   :  { %v970_v20 = vpop.xlane.xlu0 %969  ;;  %v2146_v21 = vrot.slane %v2118_v16, %v4811_v33  ;;  %v1194_v22 = vrot.slane %v1030_v52, %v4788_v25  ;;  %v1198_v24 = vrot.slane %v1030_v52, %v4791_v55  ;;  %v1202_v27 = vrot.slane %v1030_v52, %v4794_v26 }
 0x279   :  { %v4854_v31 = vadd.f32 %v4782_v23, %v970_v20  ;;  %v972_v49 = vpop.xlane.xlu1 %971  ;;  %v2261_v32 = vcombine.low %v2253_v15, %v2260_v10  ;;  %v2147_v50 = vcombine.low %v2125_v17, %v2132_v18  ;;  %v1206_v34 = vrot.slane %v1030_v52, %v4797_v48 }
 0x27a   :  { %v4858_v35 = vadd.f32 %v4782_v23, %v972_v49  ;;  %v2148_v36 = vcombine.low %v2139_v45, %v2146_v21  ;;  %v1210_v37 = vrot.slane %v1030_v52, %v4800_v28  ;;  %v1214_v51 = vrot.slane %v1030_v52, %v4803_v29 }
 0x27b   :  { %3690 = vperm.xlu1 %4266, %v2261_v32   ;;  %v2155_v38 = vrot.slane %v2147_v50, %v4811_v33  ;;  %v1218_v39 = vrot.slane %v1030_v52, %v4806_v30  ;;  %v2262_v40 = vcombine.low %v1190_v19, %v1194_v22  ;;  %v2263_v41 = vcombine.low %v1198_v24, %v1202_v27 }
 0x27c   :  { %v2162_v42 = vrot.slane %v2148_v36, %v4811_v33  ;;  %v982_v43 = vpop.xlane.xlu0 %981  ;;  %v2264_v44 = vcombine.low %v1206_v34, %v1210_v37  ;;  %v1126_v59 = vrot.slane %v4824_v58, %v4785_v47  ;;  %v1130_v53 = vrot.slane %v4824_v58, %v4788_v25 }
 0x27d   :  { %v4870_v60 = vadd.f32 %v4782_v23, %v982_v43  ;;  %v984_v54 = vpop.xlane.xlu1 %983  ;;  %v2265_v61 = vcombine.low %v1214_v51, %v1218_v39  ;;  %v2272_v62 = vrot.slane %v2262_v40, %v4811_v33  ;;  %v2279_v52 = vrot.slane %v2263_v41, %v4811_v33 }
 0x27e   :  { %v2163_v63 = vcombine.low %v2155_v38, %v2162_v42  ;;  %v4875_v0 = vadd.f32 %v4782_v23, %v984_v54  ;;  %v2286_v56 = vrot.slane %v2264_v44, %v4811_v33  ;;  %v1134_v1 = vrot.slane %v4824_v58, %v4791_v55 }
 0x27f   :  { %v2293_v3 = vrot.slane %v2265_v61, %v4811_v33  ;;  %v2294_v4 = vcombine.low %v2272_v62, %v2279_v52  ;;  %v1138_v57 = vrot.slane %v4824_v58, %v4794_v26  ;;  %v1142_v6 = vrot.slane %v4824_v58, %v4797_v48 }
 0x280   :  { %3684 = vperm.xlu0 %4267, %v2163_v63   ;;  %v978_v7 = vpop.xlane.xlu0 %977  ;;  %v1146_v9 = vrot.slane %v4824_v58, %v4800_v28  ;;  %v1150_v12 = vrot.slane %v4824_v58, %v4803_v29  ;;  %v1154_v13 = vrot.slane %v4824_v58, %v4806_v30  ;;  %v2164_v2 = vcombine.low %v1126_v59, %v1130_v53 }
 0x281   :  { %v2295_v14 = vcombine.low %v2286_v56, %v2293_v3  ;;  %v2302_v15 = vrot.slane %v2294_v4, %v4811_v33  ;;  %v4893_v16 = vadd.f32 %v4782_v23, %v978_v7  ;;  %v980_v17 = vpop.xlane.xlu1 %979  ;;  %v2165_v10 = vcombine.low %v1134_v1, %v1138_v57 }
 0x282   :  { %v4896_v18 = vadd.f32 %v4782_v23, %v980_v17  ;;  %v2166_v45 = vcombine.low %v1142_v6, %v1146_v9  ;;  %v2167_v19 = vcombine.low %v1150_v12, %v1154_v13  ;;  %v2174_v20 = vrot.slane %v2164_v2, %v4811_v33 }
 0x283   :  { %v2309_v21 = vrot.slane %v2295_v14, %v4811_v33  ;;  %v2181_v58 = vrot.slane %v2165_v10, %v4811_v33  ;;  %v1286_v22 = vrot.slane %v4838_v11, %v4785_v47  ;;  %v1290_v24 = vrot.slane %v4838_v11, %v4788_v25 }
 0x284   :  { %v2188_v27 = vrot.slane %v2166_v45, %v4811_v33  ;;  %v2195_v49 = vrot.slane %v2167_v19, %v4811_v33  ;;  %v990_v32 = vpop.xlane.xlu0 %989  ;;  %v1294_v50 = vrot.slane %v4838_v11, %v4791_v55  ;;  %v1298_v34 = vrot.slane %v4838_v11, %v4794_v26 }
 0x285   :  { %v2310_v36 = vcombine.low %v2302_v15, %v2309_v21  ;;  %v2196_v37 = vcombine.low %v2174_v20, %v2181_v58  ;;  %v4912_v51 = vadd.f32 %v4782_v23, %v990_v32  ;;  %v992_v38 = vpop.xlane.xlu1 %991  ;;  %v1302_v39 = vrot.slane %v4838_v11, %v4797_v48 }
 0x286   :  { %v2197_v40 = vcombine.low %v2188_v27, %v2195_v49  ;;  %v4917_v41 = vadd.f32 %v4782_v23, %v992_v38  ;;  %v1306_v42 = vrot.slane %v4838_v11, %v4800_v28  ;;  %v1310_v43 = vrot.slane %v4838_v11, %v4803_v29 }
 0x287   :  { %3693 = vperm.xlu1 %4266, %v2310_v36   ;;  %v2204_v44 = vrot.slane %v2196_v37, %v4811_v33  ;;  %v1314_v59 = vrot.slane %v4838_v11, %v4806_v30  ;;  %v2409_v53 = vcombine.low %v1286_v22, %v1290_v24  ;;  %v2410_v54 = vcombine.low %v1294_v50, %v1298_v34 }
 0x288   :  { %v2211_v61 = vrot.slane %v2197_v40, %v4811_v33  ;;  %v2411_v62 = vcombine.low %v1302_v39, %v1306_v42  ;;  %v986_v52 = vpop.xlane.xlu0 %985  ;;  %v1222_v63 = vrot.slane %v4854_v31, %v4785_v47  ;;  %v1226_v56 = vrot.slane %v4854_v31, %v4788_v25 }
 0x289   :  { %v2412_v1 = vcombine.low %v1310_v43, %v1314_v59  ;;  %v2419_v3 = vrot.slane %v2409_v53, %v4811_v33  ;;  %v2426_v4 = vrot.slane %v2410_v54, %v4811_v33  ;;  %v4934_v57 = vadd.f32 %v4782_v23, %v986_v52  ;;  %v988_v11 = vpop.xlane.xlu1 %987 }
 0x28a   :  { %v2212_v6 = vcombine.low %v2204_v44, %v2211_v61  ;;  %v2433_v7 = vrot.slane %v2411_v62, %v4811_v33  ;;  %v4938_v9 = vadd.f32 %v4782_v23, %v988_v11  ;;  %v1230_v12 = vrot.slane %v4854_v31, %v4791_v55 }
 0x28b   :  { %v2440_v13 = vrot.slane %v2412_v1, %v4811_v33  ;;  %v2441_v2 = vcombine.low %v2419_v3, %v2426_v4  ;;  %v1234_v14 = vrot.slane %v4854_v31, %v4794_v26  ;;  %v1238_v15 = vrot.slane %v4854_v31, %v4797_v48 }
 0x28c   :  { %3687 = vperm.xlu1 %4266, %v2212_v6   ;;  %v1242_v17 = vrot.slane %v4854_v31, %v4800_v28  ;;  %v1246_v10 = vrot.slane %v4854_v31, %v4803_v29  ;;  %v1250_v45 = vrot.slane %v4854_v31, %v4806_v30  ;;  %v2311_v19 = vcombine.low %v1222_v63, %v1226_v56 }
 0x28d   :  { %v2442_v20 = vcombine.low %v2433_v7, %v2440_v13  ;;  %v2449_v21 = vrot.slane %v2441_v2, %v4811_v33  ;;  %v2312_v58 = vcombine.low %v1230_v12, %v1234_v14  ;;  %v998_v22 = vpop.xlane.xlu0 %997  ;;  %v1318_v24 = vrot.slane %v4841_v5, %v4785_v47 }
 0x28e   :  { %v2313_v27 = vcombine.low %v1238_v15, %v1242_v17  ;;  %v2314_v49 = vcombine.low %v1246_v10, %v1250_v45  ;;  %v2321_v32 = vrot.slane %v2311_v19, %v4811_v33  ;;  %v4958_v50 = vadd.f32 %v4782_v23, %v998_v22 }
 0x28f   :  { %v2456_v34 = vrot.slane %v2442_v20, %v4811_v33  ;;  %v2328_v31 = vrot.slane %v2312_v58, %v4811_v33  ;;  %v1322_v36 = vrot.slane %v4841_v5, %v4788_v25  ;;  %v1326_v37 = vrot.slane %v4841_v5, %v4791_v55  ;;  %v1000_v43 = vpop.xlane.xlu1 %999 }
 0x290   :  { %v2335_v38 = vrot.slane %v2313_v27, %v4811_v33  ;;  %v2342_v39 = vrot.slane %v2314_v49, %v4811_v33  ;;  %v1330_v40 = vrot.slane %v4841_v5, %v4794_v26  ;;  %v1334_v42 = vrot.slane %v4841_v5, %v4797_v48 }
 0x291   :  { %v2457_v44 = vcombine.low %v2449_v21, %v2456_v34  ;;  %v2343_v59 = vcombine.low %v2321_v32, %v2328_v31  ;;  %v1338_v53 = vrot.slane %v4841_v5, %v4800_v28  ;;  %v1342_v54 = vrot.slane %v4841_v5, %v4803_v29  ;;  %v994_v15 = vpop.xlane.xlu0 %993 }
 0x292   :  { %v2344_v61 = vcombine.low %v2335_v38, %v2342_v39  ;;  %v1346_v62 = vrot.slane %v4841_v5, %v4806_v30  ;;  %v2458_v52 = vcombine.low %v1318_v24, %v1322_v36  ;;  %v2459_v63 = vcombine.low %v1326_v37, %v1330_v40 }
 0x293   :  { %3702 = vperm.xlu1 %4266, %v2457_v44   ;;  %v2351_v56 = vrot.slane %v2343_v59, %v4811_v33  ;;  %v2460_v1 = vcombine.low %v1334_v42, %v1338_v53  ;;  %v4980_v3 = vadd.f32 %v4782_v23, %v1000_v43  ;;  %v1382_v4 = vrot.slane %v4896_v18, %v4785_v47  ;;  %v996_v42 = vpop.xlane.xlu1 %995 }
 0x294   :  { %v2358_v11 = vrot.slane %v2344_v61, %v4811_v33  ;;  %v2461_v6 = vcombine.low %v1342_v54, %v1346_v62  ;;  %v2468_v7 = vrot.slane %v2458_v52, %v4811_v33  ;;  %v2475_v12 = vrot.slane %v2459_v63, %v4811_v33 }
 0x295   :  { %v2482_v5 = vrot.slane %v2460_v1, %v4811_v33  ;;  %v1386_v13 = vrot.slane %v4896_v18, %v4788_v25  ;;  %v1390_v2 = vrot.slane %v4896_v18, %v4791_v55  ;;  %v1394_v14 = vrot.slane %v4896_v18, %v4794_v26  ;;  %v1006_v54 = vpop.xlane.xlu0 %1005 }
 0x296   :  { %v2359_v17 = vcombine.low %v2351_v56, %v2358_v11  ;;  %v2489_v10 = vrot.slane %v2461_v6, %v4811_v33  ;;  %v2490_v45 = vcombine.low %v2468_v7, %v2475_v12  ;;  %v1398_v19 = vrot.slane %v4896_v18, %v4797_v48 }
 0x297   :  { %v1402_v20 = vrot.slane %v4896_v18, %v4800_v28  ;;  %v1406_v21 = vrot.slane %v4896_v18, %v4803_v29  ;;  %v1410_v58 = vrot.slane %v4896_v18, %v4806_v30  ;;  %v2556_v22 = vcombine.low %v1382_v4, %v1386_v13 }
 0x298   :  { %3696 = vperm.xlu1 %4266, %v2359_v17   ;;  %v2491_v24 = vcombine.low %v2482_v5, %v2489_v10  ;;  %v2498_v27 = vrot.slane %v2490_v45, %v4811_v33  ;;  %v2557_v49 = vcombine.low %v1390_v2, %v1394_v14  ;;  %v5005_v32 = vadd.f32 %v4782_v23, %v994_v15 }
 0x299   :  { %v2558_v34 = vcombine.low %v1398_v19, %v1402_v20  ;;  %v2559_v31 = vcombine.low %v1406_v21, %v1410_v58  ;;  %v2566_v36 = vrot.slane %v2556_v22, %v4811_v33  ;;  %v1254_v37 = vrot.slane %v4858_v35, %v4785_v47  ;;  %v1008_v19 = vpop.xlane.xlu1 %1007 }
 0x29a   :  { %v2505_v38 = vrot.slane %v2491_v24, %v4811_v33  ;;  %v2573_v18 = vrot.slane %v2557_v49, %v4811_v33  ;;  %v1258_v39 = vrot.slane %v4858_v35, %v4788_v25  ;;  %v1262_v40 = vrot.slane %v4858_v35, %v4791_v55  ;;  %v1002_v24 = vpop.xlane.xlu0 %1001 }
 0x29b   :  { %v2580_v43 = vrot.slane %v2558_v34, %v4811_v33  ;;  %v2587_v44 = vrot.slane %v2559_v31, %v4811_v33  ;;  %v1266_v59 = vrot.slane %v4858_v35, %v4794_v26  ;;  %v1270_v53 = vrot.slane %v4858_v35, %v4797_v48 }
 0x29c   :  { %v2506_v61 = vcombine.low %v2498_v27, %v2505_v38  ;;  %v2588_v62 = vcombine.low %v2566_v36, %v2573_v18  ;;  %v1274_v52 = vrot.slane %v4858_v35, %v4800_v28  ;;  %v1278_v63 = vrot.slane %v4858_v35, %v4803_v29 }
 0x29d   :  { %v2589_v56 = vcombine.low %v2580_v43, %v2587_v44  ;;  %v1282_v1 = vrot.slane %v4858_v35, %v4806_v30  ;;  %v2360_v4 = vcombine.low %v1254_v37, %v1258_v39  ;;  %v2361_v11 = vcombine.low %v1262_v40, %v1266_v59 }
 0x29e   :  { %3705 = vperm.xlu1 %4266, %v2506_v61   ;;  %v2596_v6 = vrot.slane %v2588_v62, %v4811_v33  ;;  %v2362_v7 = vcombine.low %v1270_v53, %v1274_v52  ;;  %v5030_v12 = vadd.f32 %v4782_v23, %v996_v42  ;;  %v5033_v5 = vadd.f32 %v4782_v23, %v1006_v54 }
 0x29f   :  { %v2603_v13 = vrot.slane %v2589_v56, %v4811_v33  ;;  %v2363_v2 = vcombine.low %v1278_v63, %v1282_v1  ;;  %v2370_v14 = vrot.slane %v2360_v4, %v4811_v33  ;;  %v2377_v15 = vrot.slane %v2361_v11, %v4811_v33  ;;  %v1004_v63 = vpop.xlane.xlu1 %1003 }
 0x2a0   :  { %v2384_v35 = vrot.slane %v2362_v7, %v4811_v33  ;;  %v1414_v17 = vrot.slane %v4870_v60, %v4785_v47  ;;  %v1418_v10 = vrot.slane %v4870_v60, %v4788_v25  ;;  %v1422_v45 = vrot.slane %v4870_v60, %v4791_v55 }
 0x2a1   :  { %v2604_v20 = vcombine.low %v2596_v6, %v2603_v13  ;;  %v2391_v21 = vrot.slane %v2363_v2, %v4811_v33  ;;  %v2392_v58 = vcombine.low %v2370_v14, %v2377_v15  ;;  %v1426_v22 = vrot.slane %v4870_v60, %v4794_v26  ;;  %v1014_v6 = vpop.xlane.xlu0 %1013 }
 0x2a2   :  { %v1430_v27 = vrot.slane %v4870_v60, %v4797_v48  ;;  %v1434_v49 = vrot.slane %v4870_v60, %v4800_v28  ;;  %v1438_v34 = vrot.slane %v4870_v60, %v4803_v29  ;;  %v1442_v31 = vrot.slane %v4870_v60, %v4806_v30 }
 0x2a3   :  { %3711 = vperm.xlu0 %4267, %v2604_v20   ;;  %v2393_v36 = vcombine.low %v2384_v35, %v2391_v21  ;;  %v2400_v37 = vrot.slane %v2392_v58, %v4811_v33  ;;  %v2605_v38 = vcombine.low %v1414_v17, %v1418_v10  ;;  %v2606_v18 = vcombine.low %v1422_v45, %v1426_v22 }
 0x2a4   :  { %v2607_v39 = vcombine.low %v1430_v27, %v1434_v49  ;;  %v2608_v40 = vcombine.low %v1438_v34, %v1442_v31  ;;  %v5058_v42 = vadd.f32 %v4782_v23, %v1008_v19  ;;  %v5061_v43 = vadd.f32 %v4782_v23, %v1002_v24 }
 0x2a5   :  { %v2407_v44 = vrot.slane %v2393_v36, %v4811_v33  ;;  %v2615_v59 = vrot.slane %v2605_v38, %v4811_v33  ;;  %v2622_v60 = vrot.slane %v2606_v18, %v4811_v33  ;;  %v1350_v53 = vrot.slane %v4893_v16, %v4785_v47 }
 0x2a6   :  { %v2629_v54 = vrot.slane %v2607_v39, %v4811_v33  ;;  %v2636_v61 = vrot.slane %v2608_v40, %v4811_v33  ;;  %v1354_v62 = vrot.slane %v4893_v16, %v4788_v25  ;;  %v1358_v52 = vrot.slane %v4893_v16, %v4791_v55 }
 0x2a7   :  { %v2408_v56 = vcombine.low %v2400_v37, %v2407_v44  ;;  %v2637_v1 = vcombine.low %v2615_v59, %v2622_v60  ;;  %v1362_v4 = vrot.slane %v4893_v16, %v4794_v26  ;;  %v1366_v11 = vrot.slane %v4893_v16, %v4797_v48 }
 0x2a8   :  { %v2638_v7 = vcombine.low %v2629_v54, %v2636_v61  ;;  %v1370_v13 = vrot.slane %v4893_v16, %v4800_v28  ;;  %v1374_v2 = vrot.slane %v4893_v16, %v4803_v29  ;;  %v1378_v14 = vrot.slane %v4893_v16, %v4806_v30 }
 0x2a9   :  { %3699 = vperm.xlu1 %4266, %v2408_v56   ;;  %v2645_v15 = vrot.slane %v2637_v1, %v4811_v33  ;;  %v2507_v35 = vcombine.low %v1350_v53, %v1354_v62  ;;  %v2508_v17 = vcombine.low %v1358_v52, %v1362_v4  ;;  %v5086_v10 = vadd.f32 %v4782_v23, %v1004_v63 }
 0x2aa   :  { %v2652_v45 = vrot.slane %v2638_v7, %v4811_v33  ;;  %v2509_v19 = vcombine.low %v1366_v11, %v1370_v13  ;;  %v2510_v20 = vcombine.low %v1374_v2, %v1378_v14  ;;  %v5090_v21 = vadd.f32 %v4782_v23, %v1014_v6  ;;  %v1016_v6 = vpop.xlane.xlu1 %1015 }
 0x2ab   :  { %v2517_v58 = vrot.slane %v2507_v35, %v4811_v33  ;;  %v2524_v22 = vrot.slane %v2508_v17, %v4811_v33  ;;  %v1446_v16 = vrot.slane %v4875_v0, %v4785_v47  ;;  %v1450_v24 = vrot.slane %v4875_v0, %v4788_v25 }
 0x2ac   :  { %v2653_v27 = vcombine.low %v2645_v15, %v2652_v45  ;;  %v2531_v49 = vrot.slane %v2509_v19, %v4811_v33  ;;  %v2538_v34 = vrot.slane %v2510_v20, %v4811_v33  ;;  %v1454_v31 = vrot.slane %v4875_v0, %v4791_v55  ;;  %v1010_v15 = vpop.xlane.xlu0 %1009 }
 0x2ad   :  { %v2539_v36 = vcombine.low %v2517_v58, %v2524_v22  ;;  %v1458_v37 = vrot.slane %v4875_v0, %v4794_v26  ;;  %v1462_v38 = vrot.slane %v4875_v0, %v4797_v48  ;;  %v1466_v18 = vrot.slane %v4875_v0, %v4800_v28 }
 0x2ae   :  { %3714 = vperm.xlu1 %4266, %v2653_v27   ;;  %v2540_v39 = vcombine.low %v2531_v49, %v2538_v34  ;;  %v1470_v40 = vrot.slane %v4875_v0, %v4803_v29  ;;  %v1474_v44 = vrot.slane %v4875_v0, %v4806_v30  ;;  %v2654_v59 = vcombine.low %v1446_v16, %v1450_v24 }
 0x2af   :  { %v2547_v60 = vrot.slane %v2539_v36, %v4811_v33  ;;  %v2655_v53 = vcombine.low %v1454_v31, %v1458_v37  ;;  %v2656_v54 = vcombine.low %v1462_v38, %v1466_v18  ;;  %v1702_v61 = vrot.slane %v4980_v3, %v4785_v47 }
 0x2b0   :  { %v2554_v62 = vrot.slane %v2540_v39, %v4811_v33  ;;  %v2657_v52 = vcombine.low %v1470_v40, %v1474_v44  ;;  %v2664_v63 = vrot.slane %v2654_v59, %v4811_v33  ;;  %v1706_v56 = vrot.slane %v4980_v3, %v4788_v25 }
 0x2b1   :  { %v2671_v1 = vrot.slane %v2655_v53, %v4811_v33  ;;  %v2678_v0 = vrot.slane %v2656_v54, %v4811_v33  ;;  %v1710_v4 = vrot.slane %v4980_v3, %v4791_v55  ;;  %v1714_v11 = vrot.slane %v4980_v3, %v4794_v26 }
 0x2b2   :  { %v2555_v7 = vcombine.low %v2547_v60, %v2554_v62  ;;  %v2685_v13 = vrot.slane %v2657_v52, %v4811_v33  ;;  %v1718_v2 = vrot.slane %v4980_v3, %v4797_v48  ;;  %v1722_v14 = vrot.slane %v4980_v3, %v4800_v28 }
 0x2b3   :  { %v2686_v35 = vcombine.low %v2664_v63, %v2671_v1  ;;  %v1726_v17 = vrot.slane %v4980_v3, %v4803_v29  ;;  %v1730_v45 = vrot.slane %v4980_v3, %v4806_v30  ;;  %v3046_v19 = vcombine.low %v1702_v61, %v1706_v56 }
 0x2b4   :  { %3708 = vperm.xlu1 %4266, %v2555_v7   ;;  %v2687_v20 = vcombine.low %v2678_v0, %v2685_v13  ;;  %v3047_v58 = vcombine.low %v1710_v4, %v1714_v11  ;;  %v3048_v22 = vcombine.low %v1718_v2, %v1722_v14  ;;  %v5135_v16 = vadd.f32 %v4782_v23, %v1016_v6 }
 0x2b5   :  { %v2694_v24 = vrot.slane %v2686_v35, %v4811_v33  ;;  %v3049_v27 = vcombine.low %v1726_v17, %v1730_v45  ;;  %v3056_v49 = vrot.slane %v3046_v19, %v4811_v33  ;;  %v5140_v34 = vadd.f32 %v4782_v23, %v1010_v15  ;;  %v1012_v15 = vpop.xlane.xlu1 %1011 }
 0x2b6   :  { %v2701_v31 = vrot.slane %v2687_v20, %v4811_v33  ;;  %v3063_v3 = vrot.slane %v3047_v58, %v4811_v33  ;;  %v3070_v36 = vrot.slane %v3048_v22, %v4811_v33  ;;  %v1478_v37 = vrot.slane %v4934_v57, %v4785_v47 }
 0x2b7   :  { %v3077_v38 = vrot.slane %v3049_v27, %v4811_v33  ;;  %v1482_v18 = vrot.slane %v4934_v57, %v4788_v25  ;;  %v1486_v39 = vrot.slane %v4934_v57, %v4791_v55  ;;  %v1490_v40 = vrot.slane %v4934_v57, %v4794_v26 }
 0x2b8   :  { %v2702_v44 = vcombine.low %v2694_v24, %v2701_v31  ;;  %v3078_v59 = vcombine.low %v3056_v49, %v3063_v3  ;;  %v1494_v60 = vrot.slane %v4934_v57, %v4797_v48  ;;  %v1498_v53 = vrot.slane %v4934_v57, %v4800_v28 }
 0x2b9   :  { %v3079_v54 = vcombine.low %v3070_v36, %v3077_v38  ;;  %v1502_v61 = vrot.slane %v4934_v57, %v4803_v29  ;;  %v1506_v62 = vrot.slane %v4934_v57, %v4806_v30  ;;  %v2703_v52 = vcombine.low %v1478_v37, %v1482_v18 }
 0x2ba   :  { %3717 = vperm.xlu1 %4266, %v2702_v44   ;;  %v3086_v63 = vrot.slane %v3078_v59, %v4811_v33  ;;  %v2704_v56 = vcombine.low %v1486_v39, %v1490_v40  ;;  %v2705_v1 = vcombine.low %v1494_v60, %v1498_v53  ;;  %v1638_v0 = vrot.slane %v5030_v12, %v4785_v47 }
 0x2bb   :  { %v3093_v4 = vrot.slane %v3079_v54, %v4811_v33  ;;  %v2706_v11 = vcombine.low %v1502_v61, %v1506_v62  ;;  %v2713_v6 = vrot.slane %v2703_v52, %v4811_v33  ;;  %v1642_v7 = vrot.slane %v5030_v12, %v4788_v25 }
 0x2bc   :  { %v2720_v13 = vrot.slane %v2704_v56, %v4811_v33  ;;  %v2727_v57 = vrot.slane %v2705_v1, %v4811_v33  ;;  %v1646_v2 = vrot.slane %v5030_v12, %v4791_v55  ;;  %v1650_v14 = vrot.slane %v5030_v12, %v4794_v26 }
 0x2bd   :  { %v3094_v35 = vcombine.low %v3086_v63, %v3093_v4  ;;  %v2734_v17 = vrot.slane %v2706_v11, %v4811_v33  ;;  %v1654_v45 = vrot.slane %v5030_v12, %v4797_v48  ;;  %v1658_v19 = vrot.slane %v5030_v12, %v4800_v28 }
 0x2be   :  { %v2735_v20 = vcombine.low %v2713_v6, %v2720_v13  ;;  %v1662_v58 = vrot.slane %v5030_v12, %v4803_v29  ;;  %v1666_v22 = vrot.slane %v5030_v12, %v4806_v30  ;;  %v2948_v24 = vcombine.low %v1638_v0, %v1642_v7 }
 0x2bf   :  { %3741 = vperm.xlu0 %4267, %v3094_v35   ;;  %v2736_v27 = vcombine.low %v2727_v57, %v2734_v17  ;;  %v2949_v49 = vcombine.low %v1646_v2, %v1650_v14  ;;  %v2950_v31 = vcombine.low %v1654_v45, %v1658_v19  ;;  %v5185_v3 = vadd.f32 %v4782_v23, %v1012_v15  ;;  %v1018_v19 = vpop.xlane.xlu0 %1017 }
 0x2c0   :  { %v2743_v36 = vrot.slane %v2735_v20, %v4811_v33  ;;  %v2951_v37 = vcombine.low %v1662_v58, %v1666_v22  ;;  %v2958_v38 = vrot.slane %v2948_v24, %v4811_v33  ;;  %v1510_v18 = vrot.slane %v4938_v9, %v4785_v47 }
 0x2c1   :  { %v2750_v39 = vrot.slane %v2736_v27, %v4811_v33  ;;  %v2965_v12 = vrot.slane %v2949_v49, %v4811_v33  ;;  %v2972_v40 = vrot.slane %v2950_v31, %v4811_v33  ;;  %v1514_v44 = vrot.slane %v4938_v9, %v4788_v25  ;;  %v1024_v27 = vpop.xlane.xlu1 %1023 }
 0x2c2   :  { %v2979_v59 = vrot.slane %v2951_v37, %v4811_v33  ;;  %v1518_v60 = vrot.slane %v4938_v9, %v4791_v55  ;;  %v1522_v53 = vrot.slane %v4938_v9, %v4794_v26  ;;  %v1526_v54 = vrot.slane %v4938_v9, %v4797_v48 }
 0x2c3   :  { %v2751_v61 = vcombine.low %v2743_v36, %v2750_v39  ;;  %v2980_v62 = vcombine.low %v2958_v38, %v2965_v12  ;;  %v1530_v52 = vrot.slane %v4938_v9, %v4800_v28  ;;  %v1534_v63 = vrot.slane %v4938_v9, %v4803_v29 }
 0x2c4   :  { %v2981_v56 = vcombine.low %v2972_v40, %v2979_v59  ;;  %v1538_v1 = vrot.slane %v4938_v9, %v4806_v30  ;;  %v2752_v0 = vcombine.low %v1510_v18, %v1514_v44  ;;  %v2753_v4 = vcombine.low %v1518_v60, %v1522_v53 }
 0x2c5   :  { %3720 = vperm.xlu1 %4266, %v2751_v61   ;;  %v2988_v11 = vrot.slane %v2980_v62, %v4811_v33  ;;  %v2754_v6 = vcombine.low %v1526_v54, %v1530_v52  ;;  %v1830_v7 = vrot.slane %v5058_v42, %v4785_v47  ;;  %v1834_v13 = vrot.slane %v5058_v42, %v4788_v25 }
 0x2c6   :  { %v2995_v57 = vrot.slane %v2981_v56, %v4811_v33  ;;  %v2755_v2 = vcombine.low %v1534_v63, %v1538_v1  ;;  %v2762_v14 = vrot.slane %v2752_v0, %v4811_v33  ;;  %v2769_v15 = vrot.slane %v2753_v4, %v4811_v33 }
 0x2c7   :  { %v2776_v9 = vrot.slane %v2754_v6, %v4811_v33  ;;  %v1838_v35 = vrot.slane %v5058_v42, %v4791_v55  ;;  %v1842_v17 = vrot.slane %v5058_v42, %v4794_v26  ;;  %v1846_v45 = vrot.slane %v5058_v42, %v4797_v48 }
 0x2c8   :  { %v2996_v20 = vcombine.low %v2988_v11, %v2995_v57  ;;  %v2783_v58 = vrot.slane %v2755_v2, %v4811_v33  ;;  %v2784_v22 = vcombine.low %v2762_v14, %v2769_v15  ;;  %v1850_v24 = vrot.slane %v5058_v42, %v4800_v28 }
 0x2c9   :  { %v1854_v49 = vrot.slane %v5058_v42, %v4803_v29  ;;  %v1858_v31 = vrot.slane %v5058_v42, %v4806_v30  ;;  %v3242_v36 = vcombine.low %v1830_v7, %v1834_v13  ;;  %v3243_v37 = vcombine.low %v1838_v35, %v1842_v17 }
 0x2ca   :  { %3735 = vperm.xlu0 %4267, %v2996_v20   ;;  %v2785_v38 = vcombine.low %v2776_v9, %v2783_v58  ;;  %v2792_v18 = vrot.slane %v2784_v22, %v4811_v33  ;;  %v3244_v39 = vcombine.low %v1846_v45, %v1850_v24  ;;  %v5233_v12 = vadd.f32 %v4782_v23, %v1018_v19  ;;  %v1022_v24 = vpop.xlane.xlu0 %1021 }
 0x2cb   :  { %v3245_v40 = vcombine.low %v1854_v49, %v1858_v31  ;;  %v3252_v44 = vrot.slane %v3242_v36, %v4811_v33  ;;  %v3259_v59 = vrot.slane %v3243_v37, %v4811_v33  ;;  %v5238_v60 = vadd.f32 %v4782_v23, %v1024_v27  ;;  %v1020_v27 = vpop.xlane.xlu1 %1019 }
 0x2cc   :  { %v2799_v42 = vrot.slane %v2785_v38, %v4811_v33  ;;  %v3266_v53 = vrot.slane %v3244_v39, %v4811_v33  ;;  %v1670_v54 = vrot.slane %v4958_v50, %v4785_v47  ;;  %v1674_v61 = vrot.slane %v4958_v50, %v4788_v25 }
 0x2cd   :  { %v3273_v62 = vrot.slane %v3245_v40, %v4811_v33  ;;  %v3274_v52 = vcombine.low %v3252_v44, %v3259_v59  ;;  %v1678_v63 = vrot.slane %v4958_v50, %v4791_v55  ;;  %v1682_v56 = vrot.slane %v4958_v50, %v4794_v26 }
 0x2ce   :  { %v2800_v1 = vcombine.low %v2792_v18, %v2799_v42  ;;  %v1686_v0 = vrot.slane %v4958_v50, %v4797_v48  ;;  %v1690_v4 = vrot.slane %v4958_v50, %v4800_v28  ;;  %v1694_v11 = vrot.slane %v4958_v50, %v4803_v29 }
 0x2cf   :  { %v3275_v6 = vcombine.low %v3266_v53, %v3273_v62  ;;  %v3282_v7 = vrot.slane %v3274_v52, %v4811_v33  ;;  %v1698_v13 = vrot.slane %v4958_v50, %v4806_v30  ;;  %v2997_v57 = vcombine.low %v1670_v54, %v1674_v61 }
 0x2d0   :  { %3723 = vperm.xlu1 %4266, %v2800_v1   ;;  %v2998_v2 = vcombine.low %v1678_v63, %v1682_v56  ;;  %v2999_v14 = vcombine.low %v1686_v0, %v1690_v4  ;;  %v1766_v15 = vrot.slane %v5086_v10, %v4785_v47  ;;  %v1770_v9 = vrot.slane %v5086_v10, %v4788_v25 }
 0x2d1   :  { %v3289_v35 = vrot.slane %v3275_v6, %v4811_v33  ;;  %v3000_v17 = vcombine.low %v1694_v11, %v1698_v13  ;;  %v3007_v45 = vrot.slane %v2997_v57, %v4811_v33  ;;  %v1774_v19 = vrot.slane %v5086_v10, %v4791_v55 }
 0x2d2   :  { %v3014_v50 = vrot.slane %v2998_v2, %v4811_v33  ;;  %v3021_v20 = vrot.slane %v2999_v14, %v4811_v33  ;;  %v1778_v58 = vrot.slane %v5086_v10, %v4794_v26  ;;  %v1782_v22 = vrot.slane %v5086_v10, %v4797_v48 }
 0x2d3   :  { %v3290_v49 = vcombine.low %v3282_v7, %v3289_v35  ;;  %v3028_v31 = vrot.slane %v3000_v17, %v4811_v33  ;;  %v1786_v36 = vrot.slane %v5086_v10, %v4800_v28  ;;  %v1790_v37 = vrot.slane %v5086_v10, %v4803_v29 }
 0x2d4   :  { %v3029_v38 = vcombine.low %v3007_v45, %v3014_v50  ;;  %v1794_v18 = vrot.slane %v5086_v10, %v4806_v30  ;;  %v3144_v39 = vcombine.low %v1766_v15, %v1770_v9  ;;  %v3145_v40 = vcombine.low %v1774_v19, %v1778_v58 }
 0x2d5   :  { %3753 = vperm.xlu0 %4267, %v3290_v49   ;;  %v3030_v44 = vcombine.low %v3021_v20, %v3028_v31  ;;  %v3146_v59 = vcombine.low %v1782_v22, %v1786_v36  ;;  %v5282_v42 = vadd.f32 %v4782_v23, %v1022_v24  ;;  %v5285_v53 = vadd.f32 %v4782_v23, %v1020_v27 }
 0x2d6   :  { %v3037_v54 = vrot.slane %v3029_v38, %v4811_v33  ;;  %v3147_v61 = vcombine.low %v1790_v37, %v1794_v18  ;;  %v3154_v62 = vrot.slane %v3144_v39, %v4811_v33  ;;  %v3161_v52 = vrot.slane %v3145_v40, %v4811_v33 }
 0x2d7   :  { %v3044_v10 = vrot.slane %v3030_v44, %v4811_v33  ;;  %v3168_v63 = vrot.slane %v3146_v59, %v4811_v33  ;;  %v1606_v56 = vrot.slane %v5005_v32, %v4785_v47  ;;  %v1610_v1 = vrot.slane %v5005_v32, %v4788_v25 }
 0x2d8   :  { %v3175_v23 = vrot.slane %v3147_v61, %v4811_v33  ;;  %v3176_v0 = vcombine.low %v3154_v62, %v3161_v52  ;;  %v1614_v4 = vrot.slane %v5005_v32, %v4791_v55  ;;  %v1618_v11 = vrot.slane %v5005_v32, %v4794_v26 }
 0x2d9   :  { %v3045_v6 = vcombine.low %v3037_v54, %v3044_v10  ;;  %v1622_v7 = vrot.slane %v5005_v32, %v4797_v48  ;;  %v1626_v13 = vrot.slane %v5005_v32, %v4800_v28  ;;  %v1630_v57 = vrot.slane %v5005_v32, %v4803_v29 }
 0x2da   :  { %v3177_v2 = vcombine.low %v3168_v63, %v3175_v23  ;;  %v3184_v14 = vrot.slane %v3176_v0, %v4811_v33  ;;  %v1634_v15 = vrot.slane %v5005_v32, %v4806_v30  ;;  %v2899_v9 = vcombine.low %v1606_v56, %v1610_v1 }
 0x2db   :  { %3738 = vperm.xlu1 %4266, %v3045_v6   ;;  %v2900_v35 = vcombine.low %v1614_v4, %v1618_v11  ;;  %v2901_v17 = vcombine.low %v1622_v7, %v1626_v13  ;;  %v1926_v45 = vrot.slane %v5090_v21, %v4785_v47  ;;  %v1930_v19 = vrot.slane %v5090_v21, %v4788_v25 }
 0x2dc   :  { %v3191_v50 = vrot.slane %v3177_v2, %v4811_v33  ;;  %v2902_v20 = vcombine.low %v1630_v57, %v1634_v15  ;;  %v2909_v58 = vrot.slane %v2899_v9, %v4811_v33  ;;  %v1934_v22 = vrot.slane %v5090_v21, %v4791_v55 }
 0x2dd   :  { %v2916_v32 = vrot.slane %v2900_v35, %v4811_v33  ;;  %v2923_v24 = vrot.slane %v2901_v17, %v4811_v33  ;;  %v1938_v27 = vrot.slane %v5090_v21, %v4794_v26  ;;  %v1942_v49 = vrot.slane %v5090_v21, %v4797_v48 }
 0x2de   :  { %v3192_v31 = vcombine.low %v3184_v14, %v3191_v50  ;;  %v2930_v36 = vrot.slane %v2902_v20, %v4811_v33  ;;  %v1946_v37 = vrot.slane %v5090_v21, %v4800_v28  ;;  %v1950_v38 = vrot.slane %v5090_v21, %v4803_v29 }
 0x2df   :  { %v2931_v18 = vcombine.low %v2909_v58, %v2916_v32  ;;  %v1954_v39 = vrot.slane %v5090_v21, %v4806_v30  ;;  %v3389_v40 = vcombine.low %v1926_v45, %v1930_v19  ;;  %v3390_v44 = vcombine.low %v1934_v22, %v1938_v27 }
 0x2e0   :  { %3747 = vperm.xlu0 %4267, %v3192_v31   ;;  %v2932_v59 = vcombine.low %v2923_v24, %v2930_v36  ;;  %v3391_v54 = vcombine.low %v1942_v49, %v1946_v37  ;;  %v1798_v61 = vrot.slane %v5033_v5, %v4785_v47  ;;  %v1802_v62 = vrot.slane %v5033_v5, %v4788_v25 }
 0x2e1   :  { %v2939_v52 = vrot.slane %v2931_v18, %v4811_v33  ;;  %v3392_v10 = vcombine.low %v1950_v38, %v1954_v39  ;;  %v3399_v63 = vrot.slane %v3389_v40, %v4811_v33  ;;  %v3406_v56 = vrot.slane %v3390_v44, %v4811_v33 }
 0x2e2   :  { %v2946_v21 = vrot.slane %v2932_v59, %v4811_v33  ;;  %v3413_v1 = vrot.slane %v3391_v54, %v4811_v33  ;;  %v1806_v23 = vrot.slane %v5033_v5, %v4791_v55  ;;  %v1810_v0 = vrot.slane %v5033_v5, %v4794_v26 }
 0x2e3   :  { %v3420_v4 = vrot.slane %v3392_v10, %v4811_v33  ;;  %v3421_v11 = vcombine.low %v3399_v63, %v3406_v56  ;;  %v1814_v6 = vrot.slane %v5033_v5, %v4797_v48  ;;  %v1818_v7 = vrot.slane %v5033_v5, %v4800_v28 }
 0x2e4   :  { %v2947_v13 = vcombine.low %v2939_v52, %v2946_v21  ;;  %v1822_v57 = vrot.slane %v5033_v5, %v4803_v29  ;;  %v1826_v2 = vrot.slane %v5033_v5, %v4806_v30  ;;  %v3193_v14 = vcombine.low %v1798_v61, %v1802_v62 }
 0x2e5   :  { %v3422_v15 = vcombine.low %v3413_v1, %v3420_v4  ;;  %v3429_v9 = vrot.slane %v3421_v11, %v4811_v33  ;;  %v3194_v35 = vcombine.low %v1806_v23, %v1810_v0  ;;  %v3195_v17 = vcombine.low %v1814_v6, %v1818_v7 }
 0x2e6   :  { %3732 = vperm.xlu1 %4266, %v2947_v13   ;;  %v3196_v45 = vcombine.low %v1822_v57, %v1826_v2  ;;  %v3203_v19 = vrot.slane %v3193_v14, %v4811_v33  ;;  %v1958_v50 = vrot.slane %v5135_v16, %v4785_v47  ;;  %v1962_v20 = vrot.slane %v5135_v16, %v4788_v25 }
 0x2e7   :  { %v3436_v58 = vrot.slane %v3422_v15, %v4811_v33  ;;  %v3210_v5 = vrot.slane %v3194_v35, %v4811_v33  ;;  %v3217_v22 = vrot.slane %v3195_v17, %v4811_v33  ;;  %v1966_v32 = vrot.slane %v5135_v16, %v4791_v55 }
 0x2e8   :  { %v3224_v24 = vrot.slane %v3196_v45, %v4811_v33  ;;  %v1970_v27 = vrot.slane %v5135_v16, %v4794_v26  ;;  %v1974_v49 = vrot.slane %v5135_v16, %v4797_v48  ;;  %v1978_v31 = vrot.slane %v5135_v16, %v4800_v28 }
 0x2e9   :  { %v3437_v36 = vcombine.low %v3429_v9, %v3436_v58  ;;  %v3225_v37 = vcombine.low %v3203_v19, %v3210_v5  ;;  %v1982_v38 = vrot.slane %v5135_v16, %v4803_v29  ;;  %v1986_v18 = vrot.slane %v5135_v16, %v4806_v30 }
 0x2ea   :  { %v3226_v39 = vcombine.low %v3217_v22, %v3224_v24  ;;  %v3438_v40 = vcombine.low %v1958_v50, %v1962_v20  ;;  %v3439_v44 = vcombine.low %v1966_v32, %v1970_v27  ;;  %v3440_v59 = vcombine.low %v1974_v49, %v1978_v31 }
 0x2eb   :  { %3762 = vperm.xlu0 %4267, %v3437_v36   ;;  %v3233_v54 = vrot.slane %v3225_v37, %v4811_v33  ;;  %v3441_v61 = vcombine.low %v1982_v38, %v1986_v18  ;;  %v1734_v62 = vrot.slane %v5061_v43, %v4785_v47  ;;  %v1738_v52 = vrot.slane %v5061_v43, %v4788_v25 }
 0x2ec   :  { %v3240_v10 = vrot.slane %v3226_v39, %v4811_v33  ;;  %v3448_v63 = vrot.slane %v3438_v40, %v4811_v33  ;;  %v3455_v16 = vrot.slane %v3439_v44, %v4811_v33  ;;  %v3462_v56 = vrot.slane %v3440_v59, %v4811_v33 }
 0x2ed   :  { %v3469_v21 = vrot.slane %v3441_v61, %v4811_v33  ;;  %v1742_v1 = vrot.slane %v5061_v43, %v4791_v55  ;;  %v1746_v23 = vrot.slane %v5061_v43, %v4794_v26  ;;  %v1750_v0 = vrot.slane %v5061_v43, %v4797_v48 }
 0x2ee   :  { %v3241_v4 = vcombine.low %v3233_v54, %v3240_v10  ;;  %v3470_v11 = vcombine.low %v3448_v63, %v3455_v16  ;;  %v1754_v6 = vrot.slane %v5061_v43, %v4800_v28  ;;  %v1758_v7 = vrot.slane %v5061_v43, %v4803_v29 }
 0x2ef   :  { %v3471_v13 = vcombine.low %v3462_v56, %v3469_v21  ;;  %v1762_v57 = vrot.slane %v5061_v43, %v4806_v30  ;;  %v3095_v2 = vcombine.low %v1734_v62, %v1738_v52  ;;  %v3096_v14 = vcombine.low %v1742_v1, %v1746_v23 }
 0x2f0   :  { %3750 = vperm.xlu1 %4266, %v3241_v4   ;;  %v3478_v15 = vrot.slane %v3470_v11, %v4811_v33  ;;  %v3097_v9 = vcombine.low %v1750_v0, %v1754_v6  ;;  %v1894_v35 = vrot.slane %v5185_v3, %v4785_v47  ;;  %v1898_v17 = vrot.slane %v5185_v3, %v4788_v25 }
 0x2f1   :  { %v3485_v45 = vrot.slane %v3471_v13, %v4811_v33  ;;  %v3098_v19 = vcombine.low %v1758_v7, %v1762_v57  ;;  %v3105_v50 = vrot.slane %v3095_v2, %v4811_v33  ;;  %v3112_v20 = vrot.slane %v3096_v14, %v4811_v33 }
 0x2f2   :  { %v3119_v43 = vrot.slane %v3097_v9, %v4811_v33  ;;  %v1902_v58 = vrot.slane %v5185_v3, %v4791_v55  ;;  %v1906_v5 = vrot.slane %v5185_v3, %v4794_v26  ;;  %v1910_v22 = vrot.slane %v5185_v3, %v4797_v48 }
 0x2f3   :  { %v3486_v32 = vcombine.low %v3478_v15, %v3485_v45  ;;  %v3126_v24 = vrot.slane %v3098_v19, %v4811_v33  ;;  %v3127_v27 = vcombine.low %v3105_v50, %v3112_v20  ;;  %v1914_v49 = vrot.slane %v5185_v3, %v4800_v28 }
 0x2f4   :  { %v1918_v31 = vrot.slane %v5185_v3, %v4803_v29  ;;  %v1922_v36 = vrot.slane %v5185_v3, %v4806_v30  ;;  %v3340_v37 = vcombine.low %v1894_v35, %v1898_v17  ;;  %v3341_v38 = vcombine.low %v1902_v58, %v1906_v5 }
 0x2f5   :  { %3765 = vperm.xlu0 %4267, %v3486_v32   ;;  %v3128_v18 = vcombine.low %v3119_v43, %v3126_v24  ;;  %v3135_v39 = vrot.slane %v3127_v27, %v4811_v33  ;;  %v3342_v40 = vcombine.low %v1910_v22, %v1914_v49  ;;  %v1862_v44 = vrot.slane %v5140_v34, %v4785_v47 }
 0x2f6   :  { %v3343_v59 = vcombine.low %v1918_v31, %v1922_v36  ;;  %v3350_v54 = vrot.slane %v3340_v37, %v4811_v33  ;;  %v3357_v61 = vrot.slane %v3341_v38, %v4811_v33  ;;  %v1866_v62 = vrot.slane %v5140_v34, %v4788_v25 }
 0x2f7   :  { %v3142_v3 = vrot.slane %v3128_v18, %v4811_v33  ;;  %v3364_v52 = vrot.slane %v3342_v40, %v4811_v33  ;;  %v1870_v10 = vrot.slane %v5140_v34, %v4791_v55  ;;  %v1874_v63 = vrot.slane %v5140_v34, %v4794_v26 }
 0x2f8   :  { %v3371_v16 = vrot.slane %v3343_v59, %v4811_v33  ;;  %v3372_v56 = vcombine.low %v3350_v54, %v3357_v61  ;;  %v1878_v21 = vrot.slane %v5140_v34, %v4797_v48  ;;  %v1882_v1 = vrot.slane %v5140_v34, %v4800_v28 }
 0x2f9   :  { %v3143_v23 = vcombine.low %v3135_v39, %v3142_v3  ;;  %v1886_v0 = vrot.slane %v5140_v34, %v4803_v29  ;;  %v1890_v4 = vrot.slane %v5140_v34, %v4806_v30  ;;  %v3291_v11 = vcombine.low %v1862_v44, %v1866_v62 }
 0x2fa   :  { %v3373_v6 = vcombine.low %v3364_v52, %v3371_v16  ;;  %v3380_v7 = vrot.slane %v3372_v56, %v4811_v33  ;;  %v3292_v13 = vcombine.low %v1870_v10, %v1874_v63  ;;  %v3293_v57 = vcombine.low %v1878_v21, %v1882_v1 }
 0x2fb   :  { %3744 = vperm.xlu1 %4266, %v3143_v23   ;;  %v3294_v2 = vcombine.low %v1886_v0, %v1890_v4  ;;  %v3301_v14 = vrot.slane %v3291_v11, %v4811_v33  ;;  %v2054_v15 = vrot.slane %v5282_v42, %v4785_v47  ;;  %v2058_v9 = vrot.slane %v5282_v42, %v4788_v25 }
 0x2fc   :  { %v3387_v35 = vrot.slane %v3373_v6, %v4811_v33  ;;  %v3308_v34 = vrot.slane %v3292_v13, %v4811_v33  ;;  %v3315_v17 = vrot.slane %v3293_v57, %v4811_v33  ;;  %v2062_v45 = vrot.slane %v5282_v42, %v4791_v55 }
 0x2fd   :  { %v3322_v19 = vrot.slane %v3294_v2, %v4811_v33  ;;  %v2066_v50 = vrot.slane %v5282_v42, %v4794_v26  ;;  %v2070_v20 = vrot.slane %v5282_v42, %v4797_v48  ;;  %v2074_v43 = vrot.slane %v5282_v42, %v4800_v28 }
 0x2fe   :  { %v3388_v58 = vcombine.low %v3380_v7, %v3387_v35  ;;  %v3323_v5 = vcombine.low %v3301_v14, %v3308_v34  ;;  %v2078_v22 = vrot.slane %v5282_v42, %v4803_v29  ;;  %v2082_v32 = vrot.slane %v5282_v42, %v4806_v30 }
 0x2ff   :  { %v3324_v24 = vcombine.low %v3315_v17, %v3322_v19  ;;  %v3585_v27 = vcombine.low %v2054_v15, %v2058_v9  ;;  %v3586_v49 = vcombine.low %v2062_v45, %v2066_v50  ;;  %v3587_v31 = vcombine.low %v2070_v20, %v2074_v43 }
 0x300   :  { %3759 = vperm.xlu0 %4267, %v3388_v58   ;;  %v3331_v36 = vrot.slane %v3323_v5, %v4811_v33  ;;  %v3588_v37 = vcombine.low %v2078_v22, %v2082_v32  ;;  %v1542_v38 = vrot.slane %v4912_v51, %v4785_v47  ;;  %v1546_v18 = vrot.slane %v4912_v51, %v4788_v25 }
 0x301   :  { %v3338_v39 = vrot.slane %v3324_v24, %v4811_v33  ;;  %v3595_v40 = vrot.slane %v3585_v27, %v4811_v33  ;;  %v3602_v42 = vrot.slane %v3586_v49, %v4811_v33  ;;  %v3609_v44 = vrot.slane %v3587_v31, %v4811_v33 }
 0x302   :  { %v3616_v59 = vrot.slane %v3588_v37, %v4811_v33  ;;  %v1550_v54 = vrot.slane %v4912_v51, %v4791_v55  ;;  %v1554_v61 = vrot.slane %v4912_v51, %v4794_v26  ;;  %v1558_v62 = vrot.slane %v4912_v51, %v4797_v48 }
 0x303   :  { %v3339_v3 = vcombine.low %v3331_v36, %v3338_v39  ;;  %v3617_v52 = vcombine.low %v3595_v40, %v3602_v42  ;;  %v1562_v10 = vrot.slane %v4912_v51, %v4800_v28  ;;  %v1566_v63 = vrot.slane %v4912_v51, %v4803_v29 }
 0x304   :  { %v3618_v16 = vcombine.low %v3609_v44, %v3616_v59  ;;  %v1570_v56 = vrot.slane %v4912_v51, %v4806_v30  ;;  %v2801_v21 = vcombine.low %v1542_v38, %v1546_v18  ;;  %v2802_v1 = vcombine.low %v1550_v54, %v1554_v61 }
 0x305   :  { %3756 = vperm.xlu1 %4266, %v3339_v3   ;;  %v3625_v23 = vrot.slane %v3617_v52, %v4811_v33  ;;  %v2803_v0 = vcombine.low %v1558_v62, %v1562_v10  ;;  %v1990_v4 = vrot.slane %v5233_v12, %v4785_v47  ;;  %v1994_v11 = vrot.slane %v5233_v12, %v4788_v25 }
 0x306   :  { %v3632_v6 = vrot.slane %v3618_v16, %v4811_v33  ;;  %v2804_v7 = vcombine.low %v1566_v63, %v1570_v56  ;;  %v2811_v13 = vrot.slane %v2801_v21, %v4811_v33  ;;  %v2818_v57 = vrot.slane %v2802_v1, %v4811_v33 }
 0x307   :  { %v2825_v51 = vrot.slane %v2803_v0, %v4811_v33  ;;  %v1998_v2 = vrot.slane %v5233_v12, %v4791_v55  ;;  %v2002_v14 = vrot.slane %v5233_v12, %v4794_v26  ;;  %v2006_v15 = vrot.slane %v5233_v12, %v4797_v48 }
 0x308   :  { %v3633_v9 = vcombine.low %v3625_v23, %v3632_v6  ;;  %v2832_v35 = vrot.slane %v2804_v7, %v4811_v33  ;;  %v2833_v34 = vcombine.low %v2811_v13, %v2818_v57  ;;  %v2010_v17 = vrot.slane %v5233_v12, %v4800_v28 }
 0x309   :  { %v2014_v45 = vrot.slane %v5233_v12, %v4803_v29  ;;  %v2018_v19 = vrot.slane %v5233_v12, %v4806_v30  ;;  %v3487_v50 = vcombine.low %v1990_v4, %v1994_v11  ;;  %v3488_v20 = vcombine.low %v1998_v2, %v2002_v14 }
 0x30a   :  { %3774 = vperm.xlu0 %4267, %v3633_v9   ;;  %v2834_v43 = vcombine.low %v2825_v51, %v2832_v35  ;;  %v2841_v58 = vrot.slane %v2833_v34, %v4811_v33  ;;  %v3489_v5 = vcombine.low %v2006_v15, %v2010_v17  ;;  %v1574_v22 = vrot.slane %v4917_v41, %v4785_v47 }
 0x30b   :  { %v3490_v32 = vcombine.low %v2014_v45, %v2018_v19  ;;  %v3497_v24 = vrot.slane %v3487_v50, %v4811_v33  ;;  %v3504_v27 = vrot.slane %v3488_v20, %v4811_v33  ;;  %v1578_v49 = vrot.slane %v4917_v41, %v4788_v25 }
 0x30c   :  { %v2848_v12 = vrot.slane %v2834_v43, %v4811_v33  ;;  %v3511_v31 = vrot.slane %v3489_v5, %v4811_v33  ;;  %v1582_v36 = vrot.slane %v4917_v41, %v4791_v55  ;;  %v1586_v37 = vrot.slane %v4917_v41, %v4794_v26 }
 0x30d   :  { %v3518_v38 = vrot.slane %v3490_v32, %v4811_v33  ;;  %v3519_v18 = vcombine.low %v3497_v24, %v3504_v27  ;;  %v1590_v39 = vrot.slane %v4917_v41, %v4797_v48  ;;  %v1594_v40 = vrot.slane %v4917_v41, %v4800_v28 }
 0x30e   :  { %v2849_v42 = vcombine.low %v2841_v58, %v2848_v12  ;;  %v1598_v44 = vrot.slane %v4917_v41, %v4803_v29  ;;  %v1602_v59 = vrot.slane %v4917_v41, %v4806_v30  ;;  %v2850_v54 = vcombine.low %v1574_v22, %v1578_v49 }
 0x30f   :  { %v3520_v61 = vcombine.low %v3511_v31, %v3518_v38  ;;  %v3527_v62 = vrot.slane %v3519_v18, %v4811_v33  ;;  %v2851_v3 = vcombine.low %v1582_v36, %v1586_v37  ;;  %v2852_v52 = vcombine.low %v1590_v39, %v1594_v40 }
 0x310   :  { %3726 = vperm.xlu1 %4266, %v2849_v42   ;;  %v2853_v10 = vcombine.low %v1598_v44, %v1602_v59  ;;  %v2860_v63 = vrot.slane %v2850_v54, %v4811_v33  ;;  %v2022_v16 = vrot.slane %v5285_v53, %v4785_v47  ;;  %v2026_v56 = vrot.slane %v5285_v53, %v4788_v25  ;;  %v5581_v44 = vpop.permute.xlu1 %3690 }
 0x311   :  { %v3534_v21 = vrot.slane %v3520_v61, %v4811_v33  ;;  %v2867_v41 = vrot.slane %v2851_v3, %v4811_v33  ;;  %v2874_v1 = vrot.slane %v2852_v52, %v4811_v33  ;;  %v2030_v23 = vrot.slane %v5285_v53, %v4791_v55 }
 0x312   :  { %v2881_v0 = vrot.slane %v2853_v10, %v4811_v33  ;;  %v2034_v4 = vrot.slane %v5285_v53, %v4794_v26  ;;  %v2038_v11 = vrot.slane %v5285_v53, %v4797_v48  ;;  %v2042_v6 = vrot.slane %v5285_v53, %v4800_v28 }
 0x313   :  { %v3535_v7 = vcombine.low %v3527_v62, %v3534_v21  ;;  %v2882_v13 = vcombine.low %v2860_v63, %v2867_v41  ;;  %v2046_v57 = vrot.slane %v5285_v53, %v4803_v29  ;;  %v2050_v51 = vrot.slane %v5285_v53, %v4806_v30 }
 0x314   :  { %v2883_v2 = vcombine.low %v2874_v1, %v2881_v0  ;;  %v3536_v14 = vcombine.low %v2022_v16, %v2026_v56  ;;  %v3537_v15 = vcombine.low %v2030_v23, %v2034_v4  ;;  %v3538_v9 = vcombine.low %v2038_v11, %v2042_v6  ;;  %v5583_v59 = vpop.permute.xlu1 %3693  ;;  %v3685_v56 = vpop.permute.xlu0 %3684 }
 0x315   :  { %3768 = vperm.xlu0 %4267, %v3535_v7   ;;  %v2890_v35 = vrot.slane %v2882_v13, %v4811_v33  ;;  %v3539_v34 = vcombine.low %v2046_v57, %v2050_v51  ;;  %v2086_v17 = vrot.slane %v5238_v60, %v4785_v47  ;;  %v2090_v45 = vrot.slane %v5238_v60, %v4788_v25 }
 0x316   :  { %v2897_v19 = vrot.slane %v2883_v2, %v4811_v33  ;;  %v3546_v50 = vrot.slane %v3536_v14, %v4811_v33  ;;  %v3553_v53 = vrot.slane %v3537_v15, %v4811_v33  ;;  %v3560_v20 = vrot.slane %v3538_v9, %v4811_v33 }
 0x317   :  { %v3567_v43 = vrot.slane %v3539_v34, %v4811_v33  ;;  %v2094_v58 = vrot.slane %v5238_v60, %v4791_v55  ;;  %v2098_v5 = vrot.slane %v5238_v60, %v4794_v26  ;;  %v2102_v47 = vrot.slane %v5238_v60, %v4797_v48 }
 0x318   :  { %v2898_v25 = vcombine.low %v2890_v35, %v2897_v19  ;;  %v3568_v22 = vcombine.low %v3546_v50, %v3553_v53  ;;  %v2106_v32 = vrot.slane %v5238_v60, %v4800_v28  ;;  %v2110_v24 = vrot.slane %v5238_v60, %v4803_v29  ;;  %v3688_v54 = vpop.permute.xlu1 %3687 }
 0x319   :  { %v3569_v27 = vcombine.low %v3560_v20, %v3567_v43  ;;  %v2114_v49 = vrot.slane %v5238_v60, %v4806_v30  ;;  %v3634_v12 = vcombine.low %v2086_v17, %v2090_v45  ;;  %v3635_v55 = vcombine.low %v2094_v58, %v2098_v5 }
 0x31a   :  { %3729 = vperm.xlu1 %4266, %v2898_v25   ;;  %v3576_v26 = vrot.slane %v3568_v22, %v4811_v33  ;;  %v3636_v31 = vcombine.low %v2102_v47, %v2106_v32  ;;  %v5608_v7 = vand.u32 127, %v1091_v46 }
 0x31b   :  { %v3583_v48 = vrot.slane %v3569_v27, %v4811_v33  ;;  %v3637_v36 = vcombine.low %v2110_v24, %v2114_v49  ;;  %v3644_v37 = vrot.slane %v3634_v12, %v4811_v33  ;;  %v3651_v28 = vrot.slane %v3635_v55, %v4811_v33 }
 0x31c   :  { %v3658_v38 = vrot.slane %v3636_v31, %v4811_v33  ;;  %v5585_v61 = vpop.permute.xlu1 %3702  ;;  %v3785_v57 = vadd.s32 4294967288, %v5608_v7  ;;  %v3783_v51 = vsub.s32 %v5608_v7, %v4777_v8  ;;  %v3792_v14 = vadd.s32 4294967280, %v5608_v7 }
 0x31d   :  { %v3584_v29 = vcombine.low %v3576_v26, %v3583_v48  ;;  %v3665_v18 = vrot.slane %v3637_v36, %v4811_v33  ;;  %v3666_v39 = vcombine.low %v3644_v37, %v3651_v28  ;;  %v3806_v35 = vadd.s32 4294967264, %v5608_v7 }
 0x31e   :  { %v3788_v15 = vsub.s32 %v3785_v57, %v4777_v8  ;;  %v3799_v17 = vadd.s32 4294967272, %v5608_v7  ;;  %v3795_v19 = vsub.s32 %v3792_v14, %v4777_v8  ;;  %v3813_v5 = vadd.s32 4294967256, %v5608_v7 }
 0x31f   :  { %3771 = vperm.xlu0 %4267, %v3584_v29   ;;  %v3667_v30 = vcombine.low %v3658_v38, %v3665_v18  ;;  %v3674_v60 = vrot.slane %v3666_v39, %v4811_v33  ;;  %v3809_v20 = vsub.s32 %v3806_v35, %v4777_v8  ;;  %v3820_v27 = vadd.s32 4294967248, %v5608_v7 }
 0x320   :  { %v5587_v62 = vpop.permute.xlu1 %3696  ;;  %v3802_v58 = vsub.s32 %v3799_v17, %v4777_v8  ;;  %v3789_v32 = vrot.slane %v3688_v54, %v3788_v15  ;;  %v3784_v49 = vrot.slane %v3685_v56, %v3783_v51  ;;  %v3816_v12 = vsub.s32 %v3813_v5, %v4777_v8 }
 0x321   :  { %v3681_v40 = vrot.slane %v3667_v30, %v4811_v33  ;;  %v3827_v48 = vadd.s32 4294967240, %v5608_v7  ;;  %v3796_v37 = vrot.slane %v5581_v44, %v3795_v19  ;;  %v3823_v28 = vsub.s32 %v3820_v27, %v4777_v8 }
 0x322   :  { %v5599_v21 = vpop.permute.xlu0 %3711  ;;  %v3791_v31 = vsel %vm3790_vm3, %v3789_v32, %v3784_v49  ;;  %v3834_v38 = vadd.s32 4294967232, %v5608_v7  ;;  %v3810_v30 = vrot.slane %v5587_v62, %v3809_v20  ;;  %v3855_v17 = vadd.s32 4294967208, %v5608_v7 }
 0x323   :  { %v3682_v42 = vcombine.low %v3674_v60, %v3681_v40  ;;  %v3798_v39 = vsel %vm3797_vm4, %v3796_v37, %v3791_v31  ;;  %v3803_v40 = vrot.slane %v5583_v59, %v3802_v58 }
 0x324   :  { %v5589_v3 = vpop.permute.xlu1 %3705  ;;  %v3837_v56 = vsub.s32 %v3834_v38, %v4777_v8 }
 0x325   :  { %3777 = vperm.xlu0 %4267, %v3682_v42   ;;  %v3830_v42 = vsub.s32 %v3827_v48, %v4777_v8 }
 0x327   :  { %v3831_v35 = vrot.slane %v5589_v3, %v3830_v42 }
 0x328   :  { %v5591_v52 = vpop.permute.xlu1 %3699 }
 0x329   :  { %v3817_v44 = vrot.slane %v5591_v52, %v3816_v12 }
 0x32d   :  { %v5593_v10 = vpop.permute.xlu1 %3714 }
 0x333   :  { %v5595_v63 = vpop.permute.xlu1 %3708 }
 0x339   :  { %v5597_v16 = vpop.permute.xlu1 %3717 }
 0x33e   :  { %v3742_v1 = vpop.permute.xlu0 %3741 }
 0x33f   :  { %v3907_v24 = vrot.slane %v3742_v1, %v3802_v58 }
 0x344   :  { %v5601_v41 = vpop.permute.xlu1 %3720 }
 0x349   :  { %v3736_v0 = vpop.permute.xlu0 %3735 }
 0x34a   :  { %v3897_v45 = vrot.slane %v3736_v0, %v3788_v15  ;;  %v3805_v0 = vsel %vm3804_vm5, %v3803_v40, %v3798_v39 }
 0x34b   :  { %v3812_v62 = vsel %vm3811_vm6, %v3810_v30, %v3805_v0 }
 0x34c   :  { %v3819_v57 = vsel %vm3818_vm7, %v3817_v44, %v3812_v62 }
 0x34f   :  { %v5603_v23 = vpop.permute.xlu1 %3723 }
 0x354   :  { %v5605_v11 = vpop.permute.xlu0 %3753 }
 0x35a   :  { %v3739_v4 = vpop.permute.xlu1 %3738 }
 0x35b   :  { %v3902_v43 = vrot.slane %v3739_v4, %v3795_v19  ;;  %v3841_v4 = vadd.s32 4294967224, %v5608_v7 }
 0x35d   :  { %v3844_v14 = vsub.s32 %v3841_v4, %v4777_v8 }
 0x35f   :  { %v3748_v13 = vpop.permute.xlu0 %3747  ;;  %v3845_v3 = vrot.slane %v5599_v21, %v3844_v14 }
 0x360   :  { %v3917_v36 = vrot.slane %v3748_v13, %v3816_v12 }
 0x365   :  { %v3733_v6 = vpop.permute.xlu1 %3732 }
 0x366   :  { %v3893_v9 = vrot.slane %v3733_v6, %v3783_v51  ;;  %v3927_v6 = vrot.slane %v5605_v11, %v3830_v42  ;;  %v3824_v51 = vrot.slane %v5585_v61, %v3823_v28  ;;  %v3838_v11 = vrot.slane %v5595_v63, %v3837_v56 }
 0x367   :  { %v3862_v61 = vadd.s32 4294967200, %v5608_v7 }
 0x368   :  { %v3898_v50 = vsel %vm3790_vm3, %v3897_v45, %v3893_v9  ;;  %v3826_v15 = vsel %vm3825_vm8, %v3824_v51, %v3819_v57 }
 0x369   :  { %v3903_v47 = vsel %vm3797_vm4, %v3902_v43, %v3898_v50  ;;  %v3865_v32 = vsub.s32 %v3862_v61, %v4777_v8 }
 0x36a   :  { %v5616_v34 = vpop.permute.xlu0 %3762  ;;  %v3908_v55 = vsel %vm3804_vm5, %v3907_v24, %v3903_v47  ;;  %v3858_v47 = vsub.s32 %v3855_v17, %v4777_v8  ;;  %v3876_v24 = vadd.s32 4294967184, %v5608_v7 }
 0x36c   :  { %v3859_v31 = vrot.slane %v5597_v16, %v3858_v47  ;;  %v3879_v38 = vsub.s32 %v3876_v24, %v4777_v8 }
 0x36f   :  { %v3751_v2 = vpop.permute.xlu1 %3750 }
 0x370   :  { %v3922_v60 = vrot.slane %v3751_v2, %v3823_v28  ;;  %v3848_v2 = vadd.s32 4294967216, %v5608_v7  ;;  %v3866_v28 = vrot.slane %v5601_v41, %v3865_v32 }
 0x372   :  { %v3851_v19 = vsub.s32 %v3848_v2, %v4777_v8 }
 0x374   :  { %v5625_v25 = vpop.permute.xlu0 %3765  ;;  %v3942_v63 = vrot.slane %v5616_v34, %v3851_v19 }
 0x375   :  { %v3947_v34 = vrot.slane %v5625_v25, %v3858_v47 }
 0x37a   :  { %v3745_v53 = vpop.permute.xlu1 %3744 }
 0x37b   :  { %v3912_v22 = vrot.slane %v3745_v53, %v3809_v20  ;;  %v3833_v53 = vsel %vm3832_vm9, %v3831_v35, %v3826_v15  ;;  %v3869_v20 = vadd.s32 4294967192, %v5608_v7 }
 0x37c   :  { %v3840_v58 = vsel %vm3839_vm10, %v3838_v11, %v3833_v53 }
 0x37d   :  { %v3913_v26 = vsel %vm3811_vm6, %v3912_v22, %v3908_v55  ;;  %v3883_v22 = vadd.s32 4294967176, %v5608_v7  ;;  %v3847_v49 = vsel %vm3846_vm11, %v3845_v3, %v3840_v58  ;;  %v3872_v12 = vsub.s32 %v3869_v20, %v4777_v8 }
 0x37e   :  { %v3918_v18 = vsel %vm3818_vm7, %v3917_v36, %v3913_v26  ;;  %v3852_v55 = vrot.slane %v5593_v10, %v3851_v19 }
 0x37f   :  { %v3760_v29 = vpop.permute.xlu0 %3759  ;;  %v3923_v1 = vsel %vm3825_vm8, %v3922_v60, %v3918_v18  ;;  %v3886_v36 = vsub.s32 %v3883_v22, %v4777_v8  ;;  %v3873_v10 = vrot.slane %v5603_v23, %v3872_v12 }
 0x380   :  { %v3928_v52 = vsel %vm3832_vm9, %v3927_v6, %v3923_v1  ;;  %v3937_v45 = vrot.slane %v3760_v29, %v3844_v14  ;;  %v3854_v37 = vsel %vm3853_vm12, %v3852_v55, %v3847_v49 }
 0x381   :  { %v3861_v16 = vsel %vm3860_vm13, %v3859_v31, %v3854_v37 }
 0x382   :  { %v3868_v60 = vsel %vm3867_vm14, %v3866_v28, %v3861_v16 }
 0x383   :  { %v3875_v41 = vsel %vm3874_vm15, %v3873_v10, %v3868_v60 }
 0x384   :  { %v3757_v54 = vpop.permute.xlu1 %3756 }
 0x385   :  { %v3932_v59 = vrot.slane %v3757_v54, %v3837_v56 }
 0x387   :  { %v3933_v9 = vsel %vm3839_vm10, %v3932_v59, %v3928_v52 }
 0x388   :  { %v3938_v43 = vsel %vm3846_vm11, %v3937_v45, %v3933_v9 }
 0x389   :  { %v5648_v13 = vpop.permute.xlu0 %3774  ;;  %v3943_v27 = vsel %vm3853_vm12, %v3942_v63, %v3938_v43 }
 0x38a   :  { %v3948_v48 = vsel %vm3860_vm13, %v3947_v34, %v3943_v27  ;;  %v3962_v40 = vrot.slane %v5648_v13, %v3879_v38 }
 0x38f   :  { %v3727_v5 = vpop.permute.xlu1 %3726 }
 0x390   :  { %v3880_v25 = vrot.slane %v3727_v5, %v3879_v38 }
 0x392   :  { %v3882_v8 = vsel %vm3881_vm0, %v3880_v25, %v3875_v41 }
 0x394   :  { %v3769_v50 = vpop.permute.xlu0 %3768 }
 0x395   :  { %v3952_v21 = vrot.slane %v3769_v50, %v3865_v32 }
 0x397   :  { %v3953_v18 = vsel %vm3867_vm14, %v3952_v21, %v3948_v48 }
 0x399   :  { %v3730_v29 = vpop.permute.xlu1 %3729 }
 0x39a   :  { %v3887_v39 = vrot.slane %v3730_v29, %v3886_v36 }
 0x39c   :  { %v3889_v56 = vsel %vm3888_vm1, %v3887_v39, %v3882_v8 }
 0x39e   :  { %v3772_v26 = vpop.permute.xlu0 %3771 }
 0x39f   :  { %v3957_v7 = vrot.slane %v3772_v26, %v3872_v12 }
 0x3a1   :  { %v3958_v30 = vsel %vm3874_vm15, %v3957_v7, %v3953_v18 }
 0x3a2   :  { %v3963_v54 = vsel %vm3881_vm0, %v3962_v40, %v3958_v30 }
 0x3a4   :  { %v3778_v42 = vpop.permute.xlu0 %3777 }
 0x3a5   :  { %v3967_v44 = vrot.slane %v3778_v42, %v3886_v36 }
 0x3a7   :  { %v3968_v1 = vsel %vm3888_vm1, %v3967_v44, %v3963_v54 }
 0x3a8   :  { %v3969_v23 = vcombine.low %v3889_v56, %v3968_v1 }
 0x3aa   :  { %v3976_v0 = vrot.slane %v3969_v23, %v4811_v33 }
 0x3ac   :  { %v3983_v4 = vrot.slane %v3976_v0, %v4811_v33 }
 0x3ae   :  { %3989 = vst.msk [vmem:[#allocation3] sm:$0x3] %vm3987_vm2, %v3983_v4 }
 0x3af   :  { %4289 = shalt.err (!%p4286_p4)
}
 0x3b0   :  { %s4290_s24 = scalar_lea.hbm %s5708_s9, 32 }
 0x3b1   :  { %p4291_p5 = scmp.ne.s32.totalorder %s5708_s9, %s4290_s24  ;;  %p4294_p6 = scmp.lt.u32.totalorder %s4290_s24, %s5708_s9 }
 0x3b3   :  { %p4296_p7 = pnand %p4294_p6, %p4291_p5 }
 0x3b5   :  { %4299 = shalt.err (!%p4296_p7)
}
 0x3b6   :  { %3999 = dma.vmem_to_hbm [thread:$0]  %s3997_s20, 32, %s5708_s9, [#allocation4]  }
 0x3b7   :  { %4300 = dma.done.wait [#allocation4], 32  }
 0x3b8   :  { %4301 = vsyncadd [#allocation4], 4294967264 }
 0x3b9   :  { %4003 = vsyncpa [#allocation4], 1 }

</bundles_post_ra>
